<compile_context>
chip_gen: v6e
topology: v6e:2x2x1
jax: 0.10.0
libtpu: 0.0.40
codegen_flags: <defaults>
</compile_context>

<pallas_src>
import functools
import math

import jax
import jax.numpy as jnp
from jax import lax
from jax.experimental import pallas as pl
from jax.experimental.pallas import tpu as pltpu


# --------------------------------------------------------------------------
# Pallas kernel: one block of `bb` batch elements per grid step.
# --------------------------------------------------------------------------
def _encoder_layer_kernel(
    src_ref, mask_ref,
    wq_ref, bq_ref, wk_ref, bk_ref, wv_ref, bv_ref, wo_ref, bo_ref,
    ln1_g_ref, ln1_b_ref,
    w1_ref, b1_ref, w2_ref, b2_ref,
    ln2_g_ref, ln2_b_ref,
    out_ref,
    *, num_heads, head_dim, ln_eps,
):
    bb, S, H = src_ref.shape
    nh, hd = num_heads, head_dim

    src = src_ref[...].astype(jnp.float32)            # [bb, S, H]
    x2d = src.reshape(bb * S, H)                       # fold batch into matmul rows
    x_bf = x2d.astype(jnp.bfloat16)                    # bf16 MXU operand

    # ---- Q/K/V projections: bf16 operands, f32 accumulation ------------------
    # (1/sqrt(head_dim) already folded into wq/bq by the wrapper)
    q = jnp.dot(x_bf, wq_ref[...], preferred_element_type=jnp.float32) + bq_ref[...]
    k = jnp.dot(x_bf, wk_ref[...], preferred_element_type=jnp.float32) + bk_ref[...]
    v = jnp.dot(x_bf, wv_ref[...], preferred_element_type=jnp.float32) + bv_ref[...]

    # ---- multi-head attention: single leading batch dim g = bb*nh ------------
    def to_heads(x):                                   # [bb*S, H] -> [bb*nh, S, hd]
        return (x.reshape(bb, S, nh, hd)
                 .transpose(0, 2, 1, 3)
                 .reshape(bb * nh, S, hd))

    qh = to_heads(q).astype(jnp.bfloat16)
    kh = to_heads(k).astype(jnp.bfloat16)
    vh = to_heads(v).astype(jnp.bfloat16)

    # energy[g] = Qh[g] @ Kh[g]^T   (one batched contraction, f32 accumulation)
    energy = lax.dot_general(
        qh, kh, (((2,), (2,)), ((0,), (0,))),
        preferred_element_type=jnp.float32)            # [bb*nh, S, S]

    # additive key-mask bias, computed once and kept in f32 (never cast to bf16)
    mask = mask_ref[...]                               # [bb, 1, S]
    bias = jnp.where(mask == 0.0, -1e10, 0.0).astype(jnp.float32)
    bias = jnp.broadcast_to(bias[:, None, :, :], (bb, nh, 1, S)).reshape(bb * nh, 1, S)
    energy = energy + bias                             # broadcasts over query rows

    # ---- softmax in f32; reciprocal on the EUP --------------------------------
    energy = energy - jnp.max(energy, axis=-1, keepdims=True)
    e = jnp.exp(energy)
    denom = jnp.sum(e, axis=-1, keepdims=True)
    attn = e * pl.reciprocal(denom, approx=True)

    # context[g] = attn[g] @ Vh[g]; attn cast to bf16 only for the MXU
    ctx = lax.dot_general(
        attn.astype(jnp.bfloat16), vh, (((2,), (1,)), ((0,), (0,))),
        preferred_element_type=jnp.float32)            # [bb*nh, S, hd]

    attn_cat = (ctx.reshape(bb, nh, S, hd)
                   .transpose(0, 2, 1, 3)
                   .reshape(bb * S, H))                # merge heads back to [bb*S, H]
    attn_out = jnp.dot(attn_cat.astype(jnp.bfloat16), wo_ref[...],
                       preferred_element_type=jnp.float32) + bo_ref[...]

    # ---- residual + LayerNorm 1 (f32) -----------------------------------------
    y = x2d + attn_out
    mean1 = jnp.mean(y, axis=-1, keepdims=True)
    var1 = jnp.mean((y - mean1) ** 2, axis=-1, keepdims=True)
    y = (y - mean1) * lax.rsqrt(var1 + ln_eps) * ln1_g_ref[...] + ln1_b_ref[...]

    # ---- position-wise feed-forward (bf16 MXU operands, f32 accum / ReLU) -----
    h1 = jnp.dot(y.astype(jnp.bfloat16), w1_ref[...],
                 preferred_element_type=jnp.float32) + b1_ref[...]
    h1 = jnp.maximum(h1, 0.0)
    h2 = jnp.dot(h1.astype(jnp.bfloat16), w2_ref[...],
                 preferred_element_type=jnp.float32) + b2_ref[...]

    # ---- residual + LayerNorm 2 (f32) ------------------------------------------
    z = y + h2
    mean2 = jnp.mean(z, axis=-1, keepdims=True)
    var2 = jnp.mean((z - mean2) ** 2, axis=-1, keepdims=True)
    z = (z - mean2) * lax.rsqrt(var2 + ln_eps) * ln2_g_ref[...] + ln2_b_ref[...]

    out_ref[...] = z.reshape(bb, S, H).astype(out_ref.dtype)


# --------------------------------------------------------------------------
# Wrapper: host-side weight transforms, tiling choice, pallas_call.
# --------------------------------------------------------------------------
def encoder_layer_pallas(src, src_mask, params, *, num_heads, ln_eps=1e-5):
    B, S, H = src.shape
    head_dim = H // num_heads
    PF = params["w1"].shape[1]

    # ---- one-time host-side weight transforms ---------------------------------
    inv_scale = 1.0 / math.sqrt(head_dim)
    wq_scaled = params["wq"] * inv_scale               # fold 1/sqrt(hd) into Q proj
    bq_scaled = (params["bq"] * inv_scale).astype(jnp.float32)

    def bf16(w):                                       # matmul weights -> bf16 MXU operands
        return w.astype(jnp.bfloat16)

    weight_args = (
        bf16(wq_scaled), bq_scaled,
        bf16(params["wk"]), params["bk"].astype(jnp.float32),
        bf16(params["wv"]), params["bv"].astype(jnp.float32),
        bf16(params["wo"]), params["bo"].astype(jnp.float32),
        params["ln1_g"], params["ln1_b"],
        bf16(params["w1"]), params["b1"].astype(jnp.float32),
        bf16(params["w2"]), params["b2"].astype(jnp.float32),
        params["ln2_g"], params["ln2_b"],
    )

    # ---- choose how many batch elements to fold per grid step -----------------
    def step_bytes(bb):
        rows = bb * S
        acts = rows * (6 * H + PF) * 4                 # q,k,v,ctx,y,attn_out + h1 (f32)
        scores = 2 * bb * num_heads * S * S * 4        # energy + attn (f32)
        io = 2 * 2 * rows * H * 4                      # double-buffered src/out blocks
        return acts + scores + io

    budget = 24 << 20                                  # per-step activation budget
    bb = B
    while bb > 1 and (B % bb != 0 or step_bytes(bb) > budget):
        bb -= 1
    grid = (B // bb,)

    weight_bytes = sum(int(a.size) * a.dtype.itemsize for a in weight_args)
    # Explicit scoped-VMEM budget: (double-buffered) weights + per-step working set,
    # with 2x headroom, clamped to a range that is safe on v5e/v6e/v7x.
    vmem_limit = int(min(48 << 20,
                         max(16 << 20, 2 * (2 * weight_bytes + step_bytes(bb)))))

    def const_spec(a):
        # whole-array block, constant index_map -> stays VMEM-resident across grid.
        # TODO(synk): at real weight sizes add pipeline_mode=pl.Buffered(1) here to
        #             avoid double-buffering constant weights on v7x's 64 MiB VMEM.
        nd = a.ndim
        return pl.BlockSpec(a.shape, lambda g: (0,) * nd)

    kernel = functools.partial(
        _encoder_layer_kernel,
        num_heads=num_heads, head_dim=head_dim, ln_eps=ln_eps,
    )

    return pl.pallas_call(
        kernel,
        out_shape=jax.ShapeDtypeStruct((B, S, H), src.dtype),
        grid_spec=pltpu.PrefetchScalarGridSpec(
            num_scalar_prefetch=0,
            grid=grid,
            in_specs=[
                pl.BlockSpec((bb, S, H), lambda g: (g, 0, 0)),   # src block
                pl.BlockSpec((bb, 1, S), lambda g: (g, 0, 0)),   # key-mask block
            ] + [const_spec(a) for a in weight_args],
            out_specs=pl.BlockSpec((bb, S, H), lambda g: (g, 0, 0)),
        ),
        compiler_params=pltpu.CompilerParams(
            # parallel batch-block axis -> shards across v7x's 2 TensorCores;
            # near-neutral on single-TC v5e/v6e.
            dimension_semantics=("parallel",),
            vmem_limit_bytes=vmem_limit,
        ),
    )(src, src_mask, *weight_args)


# --------------------------------------------------------------------------
# Pure-JAX f32 reference (mirrors the PyTorch forward, dropout = identity).
# --------------------------------------------------------------------------
def encoder_layer_ref(src, src_mask, params, *, num_heads, ln_eps=1e-5):
    B, S, H = src.shape
    hd = H // num_heads

    def linear(x, w, b):
        return x @ w + b

    q = linear(src, params["wq"], params["bq"])
    k = linear(src, params["wk"], params["bk"])
    v = linear(src, params["wv"], params["bv"])

    def split(x):  # [B,S,H] -> [B,nh,S,hd]
        return x.reshape(B, S, num_heads, hd).transpose(0, 2, 1, 3)

    Q, K, V = split(q), split(k), split(v)
    energy = jnp.einsum("bhqd,bhkd->bhqk", Q, K) / math.sqrt(hd)
    mask4 = src_mask[:, None, :, :]                    # [B,1,1,S]
    energy = jnp.where(mask4 == 0.0, -1e10, energy)
    attn = jax.nn.softmax(energy, axis=-1)
    x = jnp.einsum("bhqk,bhkd->bhqd", attn, V)
    x = x.transpose(0, 2, 1, 3).reshape(B, S, H)
    x = linear(x, params["wo"], params["bo"])

    def layer_norm(y, g, b):
        m = jnp.mean(y, axis=-1, keepdims=True)
        var = jnp.mean((y - m) ** 2, axis=-1, keepdims=True)
        return (y - m) * jax.lax.rsqrt(var + ln_eps) * g + b

    y = layer_norm(src + x, params["ln1_g"], params["ln1_b"])
    h1 = jnp.maximum(linear(y, params["w1"], params["b1"]), 0.0)
    h2 = linear(h1, params["w2"], params["b2"])
    return layer_norm(y + h2, params["ln2_g"], params["ln2_b"])


# --------------------------------------------------------------------------
# Main
# --------------------------------------------------------------------------
if __name__ == "__main__":
    B, S, H, NH, PF = 2, 8, 32, 4, 64

    key = jax.random.PRNGKey(0)
    ks = jax.random.split(key, 16)

    def w(k, shape, scale=0.05):
        return (scale * jax.random.normal(k, shape)).astype(jnp.float32)

    # Weights stored as [in_dim, out_dim] (already transposed vs. PyTorch Linear).
    params = {
        "wq": w(ks[0], (H, H)), "bq": w(ks[1], (1, H)),
        "wk": w(ks[2], (H, H)), "bk": w(ks[3], (1, H)),
        "wv": w(ks[4], (H, H)), "bv": w(ks[5], (1, H)),
        "wo": w(ks[6], (H, H)), "bo": w(ks[7], (1, H)),
        "ln1_g": jnp.ones((1, H), jnp.float32),
        "ln1_b": jnp.zeros((1, H), jnp.float32),
        "w1": w(ks[8], (H, PF)), "b1": w(ks[9], (1, PF)),
        "w2": w(ks[10], (PF, H)), "b2": w(ks[11], (1, H)),
        "ln2_g": jnp.ones((1, H), jnp.float32),
        "ln2_b": jnp.zeros((1, H), jnp.float32),
    }

    src = jax.random.normal(ks[12], (B, S, H), dtype=jnp.float32)
    # mask: batch 0 attends everywhere; batch 1 has its last 2 positions padded.
    mask = jnp.ones((B, 1, S), jnp.float32)
    mask = mask.at[1, 0, S - 2:].set(0.0)

    out = encoder_layer_pallas(src, mask, params, num_heads=NH)
    out = jax.block_until_ready(out)

    ref = encoder_layer_ref(src, mask, params, num_heads=NH)
    assert out.shape == (B, S, H)
    # Tolerance accounts for bf16 MXU operands (f32 accumulation) and the approx
    # (EUP) reciprocal in the softmax; reference is full f32.
    assert jnp.allclose(out, ref, rtol=2e-2, atol=2e-2), "mismatch vs reference"

    print("KERNEL_OK")
</pallas_src>

<mosaic_0001>
module attributes {stable_mosaic.version = 11 : i64} {
  func.func @_encoder_layer_kernel(%arg0: i32, %arg1: memref<2x8x32xf32, #tpu.memory_space<vmem>>, %arg2: memref<2x1x8xf32, #tpu.memory_space<vmem>>, %arg3: memref<32x32xbf16, #tpu.memory_space<vmem>>, %arg4: memref<1x32xf32, #tpu.memory_space<vmem>>, %arg5: memref<32x32xbf16, #tpu.memory_space<vmem>>, %arg6: memref<1x32xf32, #tpu.memory_space<vmem>>, %arg7: memref<32x32xbf16, #tpu.memory_space<vmem>>, %arg8: memref<1x32xf32, #tpu.memory_space<vmem>>, %arg9: memref<32x32xbf16, #tpu.memory_space<vmem>>, %arg10: memref<1x32xf32, #tpu.memory_space<vmem>>, %arg11: memref<1x32xf32, #tpu.memory_space<vmem>>, %arg12: memref<1x32xf32, #tpu.memory_space<vmem>>, %arg13: memref<32x64xbf16, #tpu.memory_space<vmem>>, %arg14: memref<1x64xf32, #tpu.memory_space<vmem>>, %arg15: memref<64x32xbf16, #tpu.memory_space<vmem>>, %arg16: memref<1x32xf32, #tpu.memory_space<vmem>>, %arg17: memref<1x32xf32, #tpu.memory_space<vmem>>, %arg18: memref<1x32xf32, #tpu.memory_space<vmem>>, %arg19: memref<2x8x32xf32, #tpu.memory_space<vmem>>) attributes {dimension_semantics = [#tpu.dimension_semantics<parallel>], iteration_bounds = array<i64: 1>, scalar_prefetch = 0 : i64, scratch_operands = 0 : i64, tpu.core_type = #tpu.core_type<tc>, window_params = [{transform_indices = @transform_0, window_bounds = array<i64: 2, 8, 32>}, {transform_indices = @transform_1, window_bounds = array<i64: 2, 1, 8>}, {pipeline_mode = #tpu.pipeline_mode<synchronous>, transform_indices = @transform_2, window_bounds = array<i64: 32, 32>}, {pipeline_mode = #tpu.pipeline_mode<synchronous>, transform_indices = @transform_3, window_bounds = array<i64: 1, 32>}, {pipeline_mode = #tpu.pipeline_mode<synchronous>, transform_indices = @transform_4, window_bounds = array<i64: 32, 32>}, {pipeline_mode = #tpu.pipeline_mode<synchronous>, transform_indices = @transform_5, window_bounds = array<i64: 1, 32>}, {pipeline_mode = #tpu.pipeline_mode<synchronous>, transform_indices = @transform_6, window_bounds = array<i64: 32, 32>}, {pipeline_mode = #tpu.pipeline_mode<synchronous>, transform_indices = @transform_7, window_bounds = array<i64: 1, 32>}, {pipeline_mode = #tpu.pipeline_mode<synchronous>, transform_indices = @transform_8, window_bounds = array<i64: 32, 32>}, {pipeline_mode = #tpu.pipeline_mode<synchronous>, transform_indices = @transform_9, window_bounds = array<i64: 1, 32>}, {pipeline_mode = #tpu.pipeline_mode<synchronous>, transform_indices = @transform_10, window_bounds = array<i64: 1, 32>}, {pipeline_mode = #tpu.pipeline_mode<synchronous>, transform_indices = @transform_11, window_bounds = array<i64: 1, 32>}, {pipeline_mode = #tpu.pipeline_mode<synchronous>, transform_indices = @transform_12, window_bounds = array<i64: 32, 64>}, {pipeline_mode = #tpu.pipeline_mode<synchronous>, transform_indices = @transform_13, window_bounds = array<i64: 1, 64>}, {pipeline_mode = #tpu.pipeline_mode<synchronous>, transform_indices = @transform_14, window_bounds = array<i64: 64, 32>}, {pipeline_mode = #tpu.pipeline_mode<synchronous>, transform_indices = @transform_15, window_bounds = array<i64: 1, 32>}, {pipeline_mode = #tpu.pipeline_mode<synchronous>, transform_indices = @transform_16, window_bounds = array<i64: 1, 32>}, {pipeline_mode = #tpu.pipeline_mode<synchronous>, transform_indices = @transform_17, window_bounds = array<i64: 1, 32>}, {transform_indices = @transform_18, window_bounds = array<i64: 2, 8, 32>}]} {
    %c0 = arith.constant 0 : index
    %c0_0 = arith.constant 0 : index
    %c0_1 = arith.constant 0 : index
    %0 = vector.load %arg1[%c0, %c0_0, %c0_1] : memref<2x8x32xf32, #tpu.memory_space<vmem>>, vector<2x8x32xf32>
    %1 = vector.shape_cast %0 : vector<2x8x32xf32> to vector<16x32xf32>
    %2 = arith.truncf %1 : vector<16x32xf32> to vector<16x32xbf16>
    %c0_2 = arith.constant 0 : index
    %c0_3 = arith.constant 0 : index
    %3 = vector.load %arg3[%c0_2, %c0_3] : memref<32x32xbf16, #tpu.memory_space<vmem>>, vector<32x32xbf16>
    %cst = arith.constant dense<0.000000e+00> : vector<16x32xf32>
    %4 = tpu.matmul %2, %3, %cst {dimension_numbers = #tpu.dot_dimension_numbers<[1], [0], [0], [1], [0, 0, 1, 1], [], []>} : vector<16x32xbf16>, vector<32x32xbf16>, vector<16x32xf32> -> vector<16x32xf32>
    %c0_4 = arith.constant 0 : index
    %c0_5 = arith.constant 0 : index
    %5 = vector.load %arg4[%c0_4, %c0_5] : memref<1x32xf32, #tpu.memory_space<vmem>>, vector<1x32xf32>
    %6 = vector.broadcast %5 : vector<1x32xf32> to vector<16x32xf32>
    %7 = arith.addf %4, %6 : vector<16x32xf32>
    %c0_6 = arith.constant 0 : index
    %c0_7 = arith.constant 0 : index
    %8 = vector.load %arg5[%c0_6, %c0_7] : memref<32x32xbf16, #tpu.memory_space<vmem>>, vector<32x32xbf16>
    %cst_8 = arith.constant dense<0.000000e+00> : vector<16x32xf32>
    %9 = tpu.matmul %2, %8, %cst_8 {dimension_numbers = #tpu.dot_dimension_numbers<[1], [0], [0], [1], [0, 0, 1, 1], [], []>} : vector<16x32xbf16>, vector<32x32xbf16>, vector<16x32xf32> -> vector<16x32xf32>
    %c0_9 = arith.constant 0 : index
    %c0_10 = arith.constant 0 : index
    %10 = vector.load %arg6[%c0_9, %c0_10] : memref<1x32xf32, #tpu.memory_space<vmem>>, vector<1x32xf32>
    %11 = vector.broadcast %10 : vector<1x32xf32> to vector<16x32xf32>
    %12 = arith.addf %9, %11 : vector<16x32xf32>
    %c0_11 = arith.constant 0 : index
    %c0_12 = arith.constant 0 : index
    %13 = vector.load %arg7[%c0_11, %c0_12] : memref<32x32xbf16, #tpu.memory_space<vmem>>, vector<32x32xbf16>
    %cst_13 = arith.constant dense<0.000000e+00> : vector<16x32xf32>
    %14 = tpu.matmul %2, %13, %cst_13 {dimension_numbers = #tpu.dot_dimension_numbers<[1], [0], [0], [1], [0, 0, 1, 1], [], []>} : vector<16x32xbf16>, vector<32x32xbf16>, vector<16x32xf32> -> vector<16x32xf32>
    %c0_14 = arith.constant 0 : index
    %c0_15 = arith.constant 0 : index
    %15 = vector.load %arg8[%c0_14, %c0_15] : memref<1x32xf32, #tpu.memory_space<vmem>>, vector<1x32xf32>
    %16 = vector.broadcast %15 : vector<1x32xf32> to vector<16x32xf32>
    %17 = arith.addf %14, %16 : vector<16x32xf32>
    %18 = vector.shape_cast %7 : vector<16x32xf32> to vector<2x8x4x8xf32>
    %19 = tpu.transpose %18, [0, 2, 1, 3] : vector<2x8x4x8xf32> -> vector<2x4x8x8xf32>
    %20 = vector.shape_cast %19 : vector<2x4x8x8xf32> to vector<8x8x8xf32>
    %21 = arith.truncf %20 : vector<8x8x8xf32> to vector<8x8x8xbf16>
    %22 = vector.shape_cast %12 : vector<16x32xf32> to vector<2x8x4x8xf32>
    %23 = tpu.transpose %22, [0, 2, 1, 3] : vector<2x8x4x8xf32> -> vector<2x4x8x8xf32>
    %24 = vector.shape_cast %23 : vector<2x4x8x8xf32> to vector<8x8x8xf32>
    %25 = arith.truncf %24 : vector<8x8x8xf32> to vector<8x8x8xbf16>
    %26 = vector.shape_cast %17 : vector<16x32xf32> to vector<2x8x4x8xf32>
    %27 = tpu.transpose %26, [0, 2, 1, 3] : vector<2x8x4x8xf32> -> vector<2x4x8x8xf32>
    %28 = vector.shape_cast %27 : vector<2x4x8x8xf32> to vector<8x8x8xf32>
    %29 = arith.truncf %28 : vector<8x8x8xf32> to vector<8x8x8xbf16>
    %cst_16 = arith.constant dense<0.000000e+00> : vector<8x8x8xf32>
    %30 = tpu.matmul %21, %25, %cst_16 {dimension_numbers = #tpu.dot_dimension_numbers<[2], [2], [1], [1], [0, 0, 0, 1, 1, 1], [0], [0]>} : vector<8x8x8xbf16>, vector<8x8x8xbf16>, vector<8x8x8xf32> -> vector<8x8x8xf32>
    %c0_17 = arith.constant 0 : index
    %c0_18 = arith.constant 0 : index
    %c0_19 = arith.constant 0 : index
    %31 = vector.load %arg2[%c0_17, %c0_18, %c0_19] : memref<2x1x8xf32, #tpu.memory_space<vmem>>, vector<2x1x8xf32>
    %cst_20 = arith.constant 0.000000e+00 : f32
    %32 = vector.broadcast %cst_20 : f32 to vector<2x1x8xf32>
    %33 = arith.cmpf oeq, %31, %32 : vector<2x1x8xf32>
    %cst_21 = arith.constant -1.000000e+10 : f32
    %cst_22 = arith.constant 0.000000e+00 : f32
    %34 = vector.broadcast %cst_21 : f32 to vector<2x1x8xf32>
    %35 = vector.broadcast %cst_22 : f32 to vector<2x1x8xf32>
    %36 = arith.select %33, %34, %35 : vector<2x1x8xi1>, vector<2x1x8xf32>
    %37 = vector.shape_cast %36 : vector<2x1x8xf32> to vector<2x1x1x8xf32>
    %38 = vector.shape_cast %37 : vector<2x1x1x8xf32> to vector<2x1x1x8xf32>
    %39 = vector.broadcast %38 : vector<2x1x1x8xf32> to vector<2x4x1x8xf32>
    %40 = vector.shape_cast %39 : vector<2x4x1x8xf32> to vector<8x1x8xf32>
    %41 = vector.broadcast %40 : vector<8x1x8xf32> to vector<8x8x8xf32>
    %42 = arith.addf %30, %41 : vector<8x8x8xf32>
    %cst_23 = arith.constant dense<0xFF800000> : vector<8x8xf32>
    %43 = vector.multi_reduction <maximumf>, %42, %cst_23 [2] : vector<8x8x8xf32> to vector<8x8xf32>
    %44 = vector.shape_cast %43 : vector<8x8xf32> to vector<8x8x1xf32>
    %45 = vector.broadcast %44 : vector<8x8x1xf32> to vector<8x8x8xf32>
    %46 = arith.subf %42, %45 : vector<8x8x8xf32>
    %47 = math.exp %46 : vector<8x8x8xf32>
    %cst_24 = arith.constant dense<0.000000e+00> : vector<8x8xf32>
    %48 = vector.multi_reduction <add>, %47, %cst_24 [2] : vector<8x8x8xf32> to vector<8x8xf32>
    %49 = vector.shape_cast %48 : vector<8x8xf32> to vector<8x8x1xf32>
    %50 = tpu.reciprocal %49 {approx = true} : vector<8x8x1xf32> -> vector<8x8x1xf32>
    %51 = vector.broadcast %50 : vector<8x8x1xf32> to vector<8x8x8xf32>
    %52 = arith.mulf %47, %51 : vector<8x8x8xf32>
    %53 = arith.truncf %52 : vector<8x8x8xf32> to vector<8x8x8xbf16>
    %cst_25 = arith.constant dense<0.000000e+00> : vector<8x8x8xf32>
    %54 = tpu.matmul %53, %29, %cst_25 {dimension_numbers = #tpu.dot_dimension_numbers<[2], [1], [1], [2], [0, 0, 0, 1, 1, 2], [0], [0]>} : vector<8x8x8xbf16>, vector<8x8x8xbf16>, vector<8x8x8xf32> -> vector<8x8x8xf32>
    %55 = vector.shape_cast %54 : vector<8x8x8xf32> to vector<2x4x8x8xf32>
    %56 = tpu.transpose %55, [0, 2, 1, 3] : vector<2x4x8x8xf32> -> vector<2x8x4x8xf32>
    %57 = vector.shape_cast %56 : vector<2x8x4x8xf32> to vector<16x32xf32>
    %58 = arith.truncf %57 : vector<16x32xf32> to vector<16x32xbf16>
    %c0_26 = arith.constant 0 : index
    %c0_27 = arith.constant 0 : index
    %59 = vector.load %arg9[%c0_26, %c0_27] : memref<32x32xbf16, #tpu.memory_space<vmem>>, vector<32x32xbf16>
    %cst_28 = arith.constant dense<0.000000e+00> : vector<16x32xf32>
    %60 = tpu.matmul %58, %59, %cst_28 {dimension_numbers = #tpu.dot_dimension_numbers<[1], [0], [0], [1], [0, 0, 1, 1], [], []>} : vector<16x32xbf16>, vector<32x32xbf16>, vector<16x32xf32> -> vector<16x32xf32>
    %c0_29 = arith.constant 0 : index
    %c0_30 = arith.constant 0 : index
    %61 = vector.load %arg10[%c0_29, %c0_30] : memref<1x32xf32, #tpu.memory_space<vmem>>, vector<1x32xf32>
    %62 = vector.broadcast %61 : vector<1x32xf32> to vector<16x32xf32>
    %63 = arith.addf %60, %62 : vector<16x32xf32>
    %64 = arith.addf %1, %63 : vector<16x32xf32>
    %cst_31 = arith.constant dense<0.000000e+00> : vector<16xf32>
    %65 = vector.multi_reduction <add>, %64, %cst_31 [1] : vector<16x32xf32> to vector<16xf32>
    %66 = vector.shape_cast %65 : vector<16xf32> to vector<16x1xf32>
    %cst_32 = arith.constant 3.200000e+01 : f32
    %67 = vector.broadcast %cst_32 : f32 to vector<16x1xf32>
    %68 = arith.divf %66, %67 : vector<16x1xf32>
    %69 = vector.broadcast %68 : vector<16x1xf32> to vector<16x32xf32>
    %70 = arith.subf %64, %69 : vector<16x32xf32>
    %71 = arith.mulf %70, %70 : vector<16x32xf32>
    %cst_33 = arith.constant dense<0.000000e+00> : vector<16xf32>
    %72 = vector.multi_reduction <add>, %71, %cst_33 [1] : vector<16x32xf32> to vector<16xf32>
    %73 = vector.shape_cast %72 : vector<16xf32> to vector<16x1xf32>
    %cst_34 = arith.constant 3.200000e+01 : f32
    %74 = vector.broadcast %cst_34 : f32 to vector<16x1xf32>
    %75 = arith.divf %73, %74 : vector<16x1xf32>
    %76 = vector.broadcast %68 : vector<16x1xf32> to vector<16x32xf32>
    %77 = arith.subf %64, %76 : vector<16x32xf32>
    %cst_35 = arith.constant 9.99999974E-6 : f32
    %78 = vector.broadcast %cst_35 : f32 to vector<16x1xf32>
    %79 = arith.addf %75, %78 : vector<16x1xf32>
    %80 = math.rsqrt %79 : vector<16x1xf32>
    %81 = vector.broadcast %80 : vector<16x1xf32> to vector<16x32xf32>
    %82 = arith.mulf %77, %81 : vector<16x32xf32>
    %c0_36 = arith.constant 0 : index
    %c0_37 = arith.constant 0 : index
    %83 = vector.load %arg11[%c0_36, %c0_37] : memref<1x32xf32, #tpu.memory_space<vmem>>, vector<1x32xf32>
    %84 = vector.broadcast %83 : vector<1x32xf32> to vector<16x32xf32>
    %85 = arith.mulf %82, %84 : vector<16x32xf32>
    %c0_38 = arith.constant 0 : index
    %c0_39 = arith.constant 0 : index
    %86 = vector.load %arg12[%c0_38, %c0_39] : memref<1x32xf32, #tpu.memory_space<vmem>>, vector<1x32xf32>
    %87 = vector.broadcast %86 : vector<1x32xf32> to vector<16x32xf32>
    %88 = arith.addf %85, %87 : vector<16x32xf32>
    %89 = arith.truncf %88 : vector<16x32xf32> to vector<16x32xbf16>
    %c0_40 = arith.constant 0 : index
    %c0_41 = arith.constant 0 : index
    %90 = vector.load %arg13[%c0_40, %c0_41] : memref<32x64xbf16, #tpu.memory_space<vmem>>, vector<32x64xbf16>
    %cst_42 = arith.constant dense<0.000000e+00> : vector<16x64xf32>
    %91 = tpu.matmul %89, %90, %cst_42 {dimension_numbers = #tpu.dot_dimension_numbers<[1], [0], [0], [1], [0, 0, 1, 1], [], []>} : vector<16x32xbf16>, vector<32x64xbf16>, vector<16x64xf32> -> vector<16x64xf32>
    %c0_43 = arith.constant 0 : index
    %c0_44 = arith.constant 0 : index
    %92 = vector.load %arg14[%c0_43, %c0_44] : memref<1x64xf32, #tpu.memory_space<vmem>>, vector<1x64xf32>
    %93 = vector.broadcast %92 : vector<1x64xf32> to vector<16x64xf32>
    %94 = arith.addf %91, %93 : vector<16x64xf32>
    %cst_45 = arith.constant 0.000000e+00 : f32
    %95 = vector.broadcast %cst_45 : f32 to vector<16x64xf32>
    %96 = arith.maximumf %94, %95 : vector<16x64xf32>
    %97 = arith.truncf %96 : vector<16x64xf32> to vector<16x64xbf16>
    %c0_46 = arith.constant 0 : index
    %c0_47 = arith.constant 0 : index
    %98 = vector.load %arg15[%c0_46, %c0_47] : memref<64x32xbf16, #tpu.memory_space<vmem>>, vector<64x32xbf16>
    %cst_48 = arith.constant dense<0.000000e+00> : vector<16x32xf32>
    %99 = tpu.matmul %97, %98, %cst_48 {dimension_numbers = #tpu.dot_dimension_numbers<[1], [0], [0], [1], [0, 0, 1, 1], [], []>} : vector<16x64xbf16>, vector<64x32xbf16>, vector<16x32xf32> -> vector<16x32xf32>
    %c0_49 = arith.constant 0 : index
    %c0_50 = arith.constant 0 : index
    %100 = vector.load %arg16[%c0_49, %c0_50] : memref<1x32xf32, #tpu.memory_space<vmem>>, vector<1x32xf32>
    %101 = vector.broadcast %100 : vector<1x32xf32> to vector<16x32xf32>
    %102 = arith.addf %99, %101 : vector<16x32xf32>
    %103 = arith.addf %88, %102 : vector<16x32xf32>
    %cst_51 = arith.constant dense<0.000000e+00> : vector<16xf32>
    %104 = vector.multi_reduction <add>, %103, %cst_51 [1] : vector<16x32xf32> to vector<16xf32>
    %105 = vector.shape_cast %104 : vector<16xf32> to vector<16x1xf32>
    %cst_52 = arith.constant 3.200000e+01 : f32
    %106 = vector.broadcast %cst_52 : f32 to vector<16x1xf32>
    %107 = arith.divf %105, %106 : vector<16x1xf32>
    %108 = vector.broadcast %107 : vector<16x1xf32> to vector<16x32xf32>
    %109 = arith.subf %103, %108 : vector<16x32xf32>
    %110 = arith.mulf %109, %109 : vector<16x32xf32>
    %cst_53 = arith.constant dense<0.000000e+00> : vector<16xf32>
    %111 = vector.multi_reduction <add>, %110, %cst_53 [1] : vector<16x32xf32> to vector<16xf32>
    %112 = vector.shape_cast %111 : vector<16xf32> to vector<16x1xf32>
    %cst_54 = arith.constant 3.200000e+01 : f32
    %113 = vector.broadcast %cst_54 : f32 to vector<16x1xf32>
    %114 = arith.divf %112, %113 : vector<16x1xf32>
    %115 = vector.broadcast %107 : vector<16x1xf32> to vector<16x32xf32>
    %116 = arith.subf %103, %115 : vector<16x32xf32>
    %cst_55 = arith.constant 9.99999974E-6 : f32
    %117 = vector.broadcast %cst_55 : f32 to vector<16x1xf32>
    %118 = arith.addf %114, %117 : vector<16x1xf32>
    %119 = math.rsqrt %118 : vector<16x1xf32>
    %120 = vector.broadcast %119 : vector<16x1xf32> to vector<16x32xf32>
    %121 = arith.mulf %116, %120 : vector<16x32xf32>
    %c0_56 = arith.constant 0 : index
    %c0_57 = arith.constant 0 : index
    %122 = vector.load %arg17[%c0_56, %c0_57] : memref<1x32xf32, #tpu.memory_space<vmem>>, vector<1x32xf32>
    %123 = vector.broadcast %122 : vector<1x32xf32> to vector<16x32xf32>
    %124 = arith.mulf %121, %123 : vector<16x32xf32>
    %c0_58 = arith.constant 0 : index
    %c0_59 = arith.constant 0 : index
    %125 = vector.load %arg18[%c0_58, %c0_59] : memref<1x32xf32, #tpu.memory_space<vmem>>, vector<1x32xf32>
    %126 = vector.broadcast %125 : vector<1x32xf32> to vector<16x32xf32>
    %127 = arith.addf %124, %126 : vector<16x32xf32>
    %128 = vector.shape_cast %127 : vector<16x32xf32> to vector<2x8x32xf32>
    %c0_60 = arith.constant 0 : index
    %c0_61 = arith.constant 0 : index
    %c0_62 = arith.constant 0 : index
    %129 = vector.load %arg19[%c0_60, %c0_61, %c0_62] : memref<2x8x32xf32, #tpu.memory_space<vmem>>, vector<2x8x32xf32>
    tpu.vector_store %arg19[%c0_60, %c0_61, %c0_62], %128 {strides = array<i32>} : memref<2x8x32xf32, #tpu.memory_space<vmem>>, vector<2x8x32xf32>,
    return
  }
  func.func @transform_0(%arg0: i32) -> (i32, i32, i32) {
    %c0_i32 = arith.constant 0 : i32
    %c0_i32_0 = arith.constant 0 : i32
    %c0_i32_1 = arith.constant 0 : i32
    return %arg0, %c0_i32, %c0_i32_0 : i32, i32, i32
  }
  func.func @transform_1(%arg0: i32) -> (i32, i32, i32) {
    %c0_i32 = arith.constant 0 : i32
    %c0_i32_0 = arith.constant 0 : i32
    %c0_i32_1 = arith.constant 0 : i32
    return %arg0, %c0_i32, %c0_i32_0 : i32, i32, i32
  }
  func.func @transform_2(%arg0: i32) -> (i32, i32) {
    %c0_i32 = arith.constant 0 : i32
    %c0_i32_0 = arith.constant 0 : i32
    %c0_i32_1 = arith.constant 0 : i32
    return %c0_i32, %c0_i32_0 : i32, i32
  }
  func.func @transform_3(%arg0: i32) -> (i32, i32) {
    %c0_i32 = arith.constant 0 : i32
    %c0_i32_0 = arith.constant 0 : i32
    %c0_i32_1 = arith.constant 0 : i32
    return %c0_i32, %c0_i32_0 : i32, i32
  }
  func.func @transform_4(%arg0: i32) -> (i32, i32) {
    %c0_i32 = arith.constant 0 : i32
    %c0_i32_0 = arith.constant 0 : i32
    %c0_i32_1 = arith.constant 0 : i32
    return %c0_i32, %c0_i32_0 : i32, i32
  }
  func.func @transform_5(%arg0: i32) -> (i32, i32) {
    %c0_i32 = arith.constant 0 : i32
    %c0_i32_0 = arith.constant 0 : i32
    %c0_i32_1 = arith.constant 0 : i32
    return %c0_i32, %c0_i32_0 : i32, i32
  }
  func.func @transform_6(%arg0: i32) -> (i32, i32) {
    %c0_i32 = arith.constant 0 : i32
    %c0_i32_0 = arith.constant 0 : i32
    %c0_i32_1 = arith.constant 0 : i32
    return %c0_i32, %c0_i32_0 : i32, i32
  }
  func.func @transform_7(%arg0: i32) -> (i32, i32) {
    %c0_i32 = arith.constant 0 : i32
    %c0_i32_0 = arith.constant 0 : i32
    %c0_i32_1 = arith.constant 0 : i32
    return %c0_i32, %c0_i32_0 : i32, i32
  }
  func.func @transform_8(%arg0: i32) -> (i32, i32) {
    %c0_i32 = arith.constant 0 : i32
    %c0_i32_0 = arith.constant 0 : i32
    %c0_i32_1 = arith.constant 0 : i32
    return %c0_i32, %c0_i32_0 : i32, i32
  }
  func.func @transform_9(%arg0: i32) -> (i32, i32) {
    %c0_i32 = arith.constant 0 : i32
    %c0_i32_0 = arith.constant 0 : i32
    %c0_i32_1 = arith.constant 0 : i32
    return %c0_i32, %c0_i32_0 : i32, i32
  }
  func.func @transform_10(%arg0: i32) -> (i32, i32) {
    %c0_i32 = arith.constant 0 : i32
    %c0_i32_0 = arith.constant 0 : i32
    %c0_i32_1 = arith.constant 0 : i32
    return %c0_i32, %c0_i32_0 : i32, i32
  }
  func.func @transform_11(%arg0: i32) -> (i32, i32) {
    %c0_i32 = arith.constant 0 : i32
    %c0_i32_0 = arith.constant 0 : i32
    %c0_i32_1 = arith.constant 0 : i32
    return %c0_i32, %c0_i32_0 : i32, i32
  }
  func.func @transform_12(%arg0: i32) -> (i32, i32) {
    %c0_i32 = arith.constant 0 : i32
    %c0_i32_0 = arith.constant 0 : i32
    %c0_i32_1 = arith.constant 0 : i32
    return %c0_i32, %c0_i32_0 : i32, i32
  }
  func.func @transform_13(%arg0: i32) -> (i32, i32) {
    %c0_i32 = arith.constant 0 : i32
    %c0_i32_0 = arith.constant 0 : i32
    %c0_i32_1 = arith.constant 0 : i32
    return %c0_i32, %c0_i32_0 : i32, i32
  }
  func.func @transform_14(%arg0: i32) -> (i32, i32) {
    %c0_i32 = arith.constant 0 : i32
    %c0_i32_0 = arith.constant 0 : i32
    %c0_i32_1 = arith.constant 0 : i32
    return %c0_i32, %c0_i32_0 : i32, i32
  }
  func.func @transform_15(%arg0: i32) -> (i32, i32) {
    %c0_i32 = arith.constant 0 : i32
    %c0_i32_0 = arith.constant 0 : i32
    %c0_i32_1 = arith.constant 0 : i32
    return %c0_i32, %c0_i32_0 : i32, i32
  }
  func.func @transform_16(%arg0: i32) -> (i32, i32) {
    %c0_i32 = arith.constant 0 : i32
    %c0_i32_0 = arith.constant 0 : i32
    %c0_i32_1 = arith.constant 0 : i32
    return %c0_i32, %c0_i32_0 : i32, i32
  }
  func.func @transform_17(%arg0: i32) -> (i32, i32) {
    %c0_i32 = arith.constant 0 : i32
    %c0_i32_0 = arith.constant 0 : i32
    %c0_i32_1 = arith.constant 0 : i32
    return %c0_i32, %c0_i32_0 : i32, i32
  }
  func.func @transform_18(%arg0: i32) -> (i32, i32, i32) {
    %c0_i32 = arith.constant 0 : i32
    %c0_i32_0 = arith.constant 0 : i32
    %c0_i32_1 = arith.constant 0 : i32
    return %arg0, %c0_i32, %c0_i32_0 : i32, i32, i32
  }
}

</mosaic_0001>

<bundles_post_ra>
// kernel: tpu_custom_call.1
= control target key start
LH: loop header
LB: loop body
LE: loop exit
PB: predicated region body
PF: predicated region fallthrough
CT: control target
= control target key end

     0   :  { %s3906_s0 = inlined_call_operand.vmem [shape: f32[2,8,32], index: 0, kind: input, shape index: {}]   ;;  %s3907_s1 = inlined_call_operand.hbm [shape: f32[2,1,8], index: 1, kind: input, shape index: {}]   ;;  %s3908_s2 = inlined_call_operand.vmem [shape: bf16[32,32], index: 2, kind: input, shape index: {}]   ;;  %s3909_s3 = inlined_call_operand.hbm [shape: f32[1,32], index: 3, kind: input, shape index: {}]   ;;  %s3910_s4 = inlined_call_operand.vmem [shape: bf16[32,32], index: 4, kind: input, shape index: {}]   ;;  %s3911_s5 = inlined_call_operand.hbm [shape: f32[1,32], index: 5, kind: input, shape index: {}]   ;;  %s3912_s6 = inlined_call_operand.hbm [shape: bf16[32,32], index: 6, kind: input, shape index: {}]   ;;  %s3913_s7 = inlined_call_operand.hbm [shape: f32[1,32], index: 7, kind: input, shape index: {}]   ;;  %s3914_s8 = inlined_call_operand.hbm [shape: bf16[32,32], index: 8, kind: input, shape index: {}]   ;;  %s3915_s9 = inlined_call_operand.hbm [shape: f32[1,32], index: 9, kind: input, shape index: {}]   ;;  %s3916_s10 = inlined_call_operand.vmem [shape: f32[1,32], index: 10, kind: input, shape index: {}]   ;;  %s3917_s11 = inlined_call_operand.vmem [shape: f32[1,32], index: 11, kind: input, shape index: {}]   ;;  %s3918_s12 = inlined_call_operand.vmem [shape: bf16[32,64], index: 12, kind: input, shape index: {}]   ;;  %s3919_s13 = inlined_call_operand.vmem [shape: f32[1,64], index: 13, kind: input, shape index: {}]   ;;  %s3920_s14 = inlined_call_operand.vmem [shape: bf16[64,32], index: 14, kind: input, shape index: {}]   ;;  %s3921_s15 = inlined_call_operand.vmem [shape: f32[1,32], index: 15, kind: input, shape index: {}]   ;;  %s3922_s16 = inlined_call_operand.vmem [shape: f32[1,32], index: 16, kind: input, shape index: {}]   ;;  %s3923_s17 = inlined_call_operand.vmem [shape: f32[1,32], index: 17, kind: input, shape index: {}]   ;;  %s3924_s18 = inlined_call_operand.hbm [shape: f32[2,8,32], index: 18, kind: output, shape index: {}]  }
   0x1   :  { %3927 = sst [smem:[#allocation20_spill]] %s3906_s0 }
   0x2   :  { %3928 = sst [smem:[#allocation21_spill]] %s3907_s1 }
   0x3   :  { %3929 = sst [smem:[#allocation22_spill]] %s3908_s2 }
   0x4   :  { %23 = vsyncpa [#allocation3], 0 }
   0x5   :  { %24 = vsyncpa [#allocation6], 0 }
   0x6   :  { %25 = vsyncpa [#allocation9], 0 }
   0x7   :  { %26 = vsyncpa [#allocation12], 0 }
   0x8   :  { %27 = vsyncpa [#allocation4], 0  ;;  %s3266_s27 = smov [#allocation5]   ;;  %s3267_s29 = smov [#allocation8]  }
   0x9   :  { %s50_s28 = sshll.u32 %s3266_s27, 4  ;;  %s71_s30 = sshll.u32 %s3267_s29, 4  ;;  %s51_s28 = int_to_ptr.vmem [resolvable:$true] %s50_s28  ;;  %s72_s30 = int_to_ptr.vmem [resolvable:$true] %s71_s30 }
   0xa   :  { %s3104_s0 = scalar_lea.vmem %s51_s28, 16  ;;  %s3108_s19 = scalar_lea.vmem %s51_s28, 32 }
   0xb   :  { %p3105_p0 = scmp.ne.s32.totalorder %s51_s28, %s3104_s0  ;;  %p3109_p1 = scmp.lt.s32.totalorder %s51_s28, %s51_s28 }
   0xc   :  { %p3110_p2 = scmp.lt.s32.totalorder %s3108_s19, %s3104_s0 }
   0xe   :  { %p3111_p3 = por %p3110_p2, %p3109_p1 }
  0x10   :  { %p3112_p4 = pnand %p3111_p3, %p3105_p0 }
  0x12   :  { %3115 = shalt.err (!%p3112_p4)
}
  0x13   :  { %53 = dma.hbm_to_vmem [thread:$0]  %s3909_s3, 16, %s51_s28, [#allocation6]  }
  0x14   :  { %s3124_s21 = scalar_lea.vmem %s72_s30, 256  ;;  %p3129_p6 = scmp.lt.s32.totalorder %s72_s30, %s72_s30 }
  0x15   :  { %p3125_p5 = scmp.ne.s32.totalorder %s72_s30, %s3124_s21  ;;  %p3130_p7 = scmp.lt.s32.totalorder %s3124_s21, %s3124_s21 }
  0x17   :  { %p3131_p8 = por %p3130_p7, %p3129_p6 }
  0x19   :  { %p3132_p9 = pnand %p3131_p8, %p3125_p5 }
  0x1b   :  { %3135 = shalt.err (!%p3132_p9)
}
  0x1c   :  { %s3268_s22 = smov 64   ;;  %s3269_s2 = smov 4  }
  0x1d   :  { %77 = dma.hbm_to_vmem [thread:$0]  %s3912_s6, 256, %s72_s30, [#allocation9], %s3268_s22, %s3268_s22, %s3269_s2  }
  0x1e   :  { %s3270_s25 = smov [#allocation11]   ;;  %s3271_s27 = smov [#allocation2]  }
  0x1f   :  { %s93_s26 = sshll.u32 %s3270_s25, 4  ;;  %s35_s29 = sshll.u32 %s3271_s27, 4  ;;  %s94_s26 = int_to_ptr.vmem [resolvable:$true] %s93_s26  ;;  %s36_s29 = int_to_ptr.vmem [resolvable:$true] %s35_s29 }
  0x20   :  { %s3144_s3 = scalar_lea.vmem %s94_s26, 256  ;;  %p3149_p11 = scmp.lt.s32.totalorder %s94_s26, %s94_s26 }
  0x21   :  { %p3145_p10 = scmp.ne.s32.totalorder %s94_s26, %s3144_s3  ;;  %p3150_p12 = scmp.lt.s32.totalorder %s3144_s3, %s3144_s3 }
  0x23   :  { %p3151_p13 = por %p3150_p12, %p3149_p11 }
  0x25   :  { %p3152_p0 = pnand %p3151_p13, %p3145_p10 }
  0x27   :  { %3155 = shalt.err (!%p3152_p0)
}
  0x28   :  { %99 = dma.hbm_to_vmem [thread:$0]  %s3914_s8, 256, %s94_s26, [#allocation12], %s3268_s22, %s3268_s22, %s3269_s2  }
  0x29   :  { %s3164_s19 = scalar_lea.vmem %s36_s29, 32  ;;  %p3169_p2 = scmp.lt.s32.totalorder %s36_s29, %s36_s29 }
  0x2a   :  { %p3165_p1 = scmp.ne.s32.totalorder %s36_s29, %s3164_s19  ;;  %p3170_p3 = scmp.lt.s32.totalorder %s3164_s19, %s3164_s19 }
  0x2c   :  { %p3171_p4 = por %p3170_p3, %p3169_p2 }
  0x2e   :  { %p3172_p5 = pnand %p3171_p4, %p3165_p1 }
  0x30   :  { %3175 = shalt.err (!%p3172_p5)
}
  0x31   :  { %s3272_s6 = smov 16   ;;  %s3273_s30 = smov 1  }
  0x32   :  { %s3930_s21 = sld [smem:[#allocation21_spill]]  ;;  %s3274_s23 = smov [#allocation7]  }
  0x33   :  { %s62_s24 = sshll.u32 %s3274_s23, 4  ;;  %s3275_s25 = smov [#allocation10]   ;;  %s63_s24 = int_to_ptr.vmem [resolvable:$true] %s62_s24 }
  0x34   :  { %s84_s27 = sshll.u32 %s3275_s25, 4  ;;  %s3184_s8 = scalar_lea.vmem %s63_s24, 16  ;;  %s85_s27 = int_to_ptr.vmem [resolvable:$true] %s84_s27 }
  0x35   :  { %p3185_p6 = scmp.ne.s32.totalorder %s63_s24, %s3184_s8  ;;  %s3188_s22 = scalar_lea.vmem %s63_s24, 32 }
  0x36   :  { %p3189_p7 = scmp.lt.s32.totalorder %s63_s24, %s63_s24  ;;  %p3190_p8 = scmp.lt.s32.totalorder %s3188_s22, %s3184_s8 }
  0x38   :  { %41 = dma.hbm_to_vmem [thread:$0]  %s3930_s21, 32, %s36_s29, [#allocation3], %s3272_s6, %s3272_s6, %s3273_s30  }
  0x39   :  { %p3191_p9 = por %p3190_p8, %p3189_p7 }
  0x3b   :  { %p3192_p10 = pnand %p3191_p9, %p3185_p6 }
  0x3d   :  { %3195 = shalt.err (!%p3192_p10)
}
  0x3e   :  { %65 = dma.hbm_to_vmem [thread:$0]  %s3911_s5, 16, %s63_s24, [#allocation6]  }
  0x3f   :  { %s3204_s3 = scalar_lea.vmem %s85_s27, 16  ;;  %s3208_s29 = scalar_lea.vmem %s85_s27, 32 }
  0x40   :  { %p3205_p11 = scmp.ne.s32.totalorder %s85_s27, %s3204_s3  ;;  %p3209_p12 = scmp.lt.s32.totalorder %s85_s27, %s85_s27 }
  0x41   :  { %p3210_p13 = scmp.lt.s32.totalorder %s3208_s29, %s3204_s3 }
  0x43   :  { %p3211_p0 = por %p3210_p13, %p3209_p12 }
  0x45   :  { %p3212_p1 = pnand %p3211_p0, %p3205_p11 }
  0x47   :  { %3215 = shalt.err (!%p3212_p1)
}
  0x48   :  { %87 = dma.hbm_to_vmem [thread:$0]  %s3913_s7, 16, %s85_s27, [#allocation9]  }
  0x49   :  { %s3276_s19 = smov [#allocation13]  }
  0x4a   :  { %s106_s30 = sshll.u32 %s3276_s19, 4  ;;  %s107_s30 = int_to_ptr.vmem [resolvable:$true] %s106_s30 }
  0x4b   :  { %s3224_s1 = scalar_lea.vmem %s107_s30, 16  ;;  %s3228_s20 = scalar_lea.vmem %s107_s30, 32 }
  0x4c   :  { %p3225_p2 = scmp.ne.s32.totalorder %s107_s30, %s3224_s1  ;;  %p3229_p3 = scmp.lt.s32.totalorder %s107_s30, %s107_s30 }
  0x4d   :  { %p3230_p4 = scmp.lt.s32.totalorder %s3228_s20, %s3224_s1 }
  0x4f   :  { %p3231_p5 = por %p3230_p4, %p3229_p3 }
  0x51   :  { %p3232_p6 = pnand %p3231_p5, %p3225_p2 }
  0x53   :  { %3235 = shalt.err (!%p3232_p6)
}
  0x54   :  { %109 = dma.hbm_to_vmem [thread:$0]  %s3915_s9, 16, %s107_s30, [#allocation12]  }
  0x55   :  { %3256 = dma.done.wait [#allocation3], 32  }
  0x56   :  { %3257 = vsyncadd [#allocation3], 4294967264 }
  0x57   :  { %3258 = dma.done.wait [#allocation6], 32  }
  0x58   :  { %3259 = vsyncadd [#allocation6], 4294967264 }
  0x59   :  { %3260 = dma.done.wait [#allocation9], 272  }
  0x5a   :  { %3261 = vsyncadd [#allocation9], 4294967024 }
  0x5b   :  { %3262 = dma.done.wait [#allocation12], 272  }
  0x5c   :  { %3263 = vsyncadd [#allocation12], 4294967024  ;;  %v3277_v0 = vmov 0.0   ;;  %vm3278_vm0 = vmmov 0   ;;  %v3040_v1 = vld [vmem:[%s3910_s4 + $0x8] sm:$0xff]   ;;  %s3931_s25 = sld [smem:[#allocation22_spill]]  ;;  %v372_v33 = vlaneseq }
  0x5d   :  { %2863 = vmatprep.subr.bf16.mxu1 %v3277_v0  ;;  %2855 = vmatprep.subr.bf16.mxu0 %v3277_v0  ;;  %v3042_v3 = vld [vmem:[%s3910_s4] sm:$0xff]   ;;  %s3932_s29 = sld [smem:[#allocation20_spill]]  ;;  %vm174_vm1 = vcmask 261120   ;;  %v3044_v8 = vld [vmem:[#allocation8 + $0x8] sm:$0xff]   ;;  %s3279_s4 = smov 104   ;;  %vm1265_vm2 = vcmask 64512  }
  0x5e   :  { %2867 = vmatprep.mubr.msk.bf16.mxu1 %vm3278_vm0, %v3277_v0  ;;  %2859 = vmatprep.mubr.msk.bf16.mxu0 %vm3278_vm0, %v3277_v0  ;;  %v3045_v9 = vld [vmem:[#allocation8] sm:$0xff]   ;;  %v2745_v10 = vld [vmem:[#allocation7] ss:$0 sm:$0xff]  ;;  %v2741_v12 = vld [vmem:[#allocation5] ss:$0 sm:$0xff]  ;;  %s3280_s19 = smov 120  }
  0x5f   :  { %2864 = vmatpush3.bf16.msra.mxu1 %v3040_v1  ;;  %s3281_s30 = smov 112   ;;  %v2749_v24 = vld [vmem:[#allocation10] ss:$0 sm:$0xff]  ;;  %v3282_v31 = vmov 1983009808   ;;  %v3478_v37 = vshrl.u32 %v372_v33, 7 }
  0x60   :  { %2865 = vmatprep.subr.bf16.mxu1 %v3277_v0  ;;  %v370_v32 = vunpack.c.l.s4 %v3282_v31  ;;  %v3283_v34 = vmov 1934713408   ;;  %vm1733_vm5 = vcmask 1043456   ;;  %s3284_s1 = smov 8   ;;  %s3285_s20 = smov 24   ;;  %vm2397_vm6 = vcmask 130048  }
  0x61   :  { %v402_v35 = vunpack.c.l.s4 %v3283_v34  ;;  %vm2400_vm7 = vcmask 195584   ;;  %vm2628_vm8 = vcmask 523264   ;;  %s3286_s5 = smov [#allocation14]  }
  0x62   :  { %v3041_v2 = vld [vmem:[%s3931_s25 + $0x8] sm:$0xff]   ;;  %v3043_v4 = vld [vmem:[%s3931_s25] sm:$0xff]   ;;  %v371_v36 = vunpack.c.0.s8 %v370_v32  ;;  %s2726_s21 = sshll.u32 %s3286_s5, 4  ;;  %s2727_s21 = int_to_ptr.vmem [resolvable:$true] %s2726_s21 }
  0x63   :  { %2856 = vmatpush3.bf16.msra.mxu0 %v3041_v2  ;;  %v148_v5 = vld [vmem:[%s3932_s29] sm:$0xff]  ;;  %v149_v6 = vld [vmem:[%s3932_s29 + $0x8] sm:$0xff]  ;;  %2866 = vmatpush3.bf16.msra.mxu1 %v3042_v3  ;;  %v403_v40 = vunpack.c.0.s8 %v402_v35  ;;  %s3236_s7 = scalar_lea.vmem %s2727_s21, 256  ;;  %p3241_p8 = scmp.lt.s32.totalorder %s2727_s21, %s2727_s21 }
  0x64   :  { %2857 = vmatprep.subr.bf16.mxu0 %v3277_v0  ;;  %v150_v7 = vpack.c.bf16 %v149_v6, %v148_v5  ;;  %2879 = vmatprep.subr.bf16.mxu1 %v3277_v0  ;;  %v3481_v41 = vsub.s32 %v371_v36, %v3478_v37  ;;  %p3237_p7 = scmp.ne.s32.totalorder %s2727_s21, %s3236_s7  ;;  %p3242_p9 = scmp.lt.s32.totalorder %s3236_s7, %s3236_s7 }
  0x65   :  { %v3484_v48 = vsub.s32 %v403_v40, %v3478_v37 }
  0x66   :  { %2868 = vmatmul.mubr.msk.bf16.vlgmr.msra.gmra.mxu1 %vm174_vm1, %v150_v7  ;;  %p3243_p10 = por %p3242_p9, %p3241_p8 }
  0x67   :  { %2858 = vmatpush3.bf16.msra.mxu0 %v3043_v4  ;;  %2881 = vmatprep.mubr.msk.bf16.mxu1 %vm3278_vm0, %v3277_v0 }
  0x68   :  { %2871 = vmatprep.subr.bf16.mxu0 %v3277_v0  ;;  %p3244_p11 = pnand %p3243_p10, %p3237_p7 }
  0x6a   :  { %2860 = vmatmul.mubr.msk.bf16.vlgmr.msra.gmra.mxu0 %vm174_vm1, %v150_v7 }
  0x6b   :  { %2875 = vmatprep.mubr.msk.bf16.mxu0 %vm3278_vm0, %v3277_v0  ;;  %2872 = vmatpush3.bf16.msra.mxu0 %v3044_v8 }
  0x6c   :  { %2873 = vmatprep.subr.bf16.mxu0 %v3277_v0 }
  0x6f   :  { %2874 = vmatpush3.bf16.msra.mxu0 %v3045_v9 }
  0x70   :  { %2885 = vmatprep.subr.bf16.mxu0 %v3277_v0 }
  0x72   :  { %2876 = vmatmul.mubr.msk.bf16.vlgmr.msra.gmra.mxu0 %vm174_vm1, %v150_v7 }
  0x73   :  { %2887 = vmatprep.mubr.msk.bf16.mxu0 %vm3278_vm0, %v3277_v0 }
 0x126   :  { %v276_v11 = vpop.f32.mrf.mxu1 }
 0x127   :  { %v277_v13 = vadd.f32 %v2745_v10, %v276_v11 }
 0x128   :  { %v2869_v15 = vpop.f32.mrf.mxu1 }
 0x129   :  { %661 = vrot.lane.b32.xlu1 %v277_v13, %s3279_s4  ;;  %649 = vrot.lane.b32.xlu0 %v277_v13, %s3280_s19 }
 0x12a   :  { %v212_v14 = vpop.f32.mrf.mxu0  ;;  %v279_v18 = vpop.f32.mrf.mxu1 }
 0x12b   :  { %v3447_v16 = vadd.f32 %v2741_v12, %v212_v14  ;;  %v3456_v22 = vadd.f32 %v2745_v10, %v279_v18 }
 0x12c   :  { %v2861_v17 = vpop.f32.mrf.mxu0  ;;  %v2870_v20 = vpop.f32.mrf.mxu1 }
 0x12d   :  { %655 = vrot.lane.b32.xlu0 %v277_v13, %s3281_s30  ;;  %349 = vrot.lane.b32.xlu1 %v3447_v16, %s3280_s19 }
 0x12e   :  { %v215_v19 = vpop.f32.mrf.mxu0 }
 0x12f   :  { %v3462_v23 = vadd.f32 %v2741_v12, %v215_v19 }
 0x130   :  { %v2862_v21 = vpop.f32.mrf.mxu0 }
 0x131   :  { %355 = vrot.lane.b32.xlu0 %v3447_v16, %s3281_s30  ;;  %361 = vrot.lane.b32.xlu1 %v3447_v16, %s3279_s4 }
 0x132   :  { %v340_v25 = vpop.f32.mrf.mxu0 }
 0x133   :  { %v3472_v26 = vadd.f32 %v2749_v24, %v340_v25 }
 0x134   :  { %v2877_v27 = vpop.f32.mrf.mxu0 }
 0x135   :  { %651 = vrot.lane.b32.xlu0 %v3456_v22, %s3280_s19  ;;  %657 = vrot.lane.b32.xlu1 %v3456_v22, %s3281_s30 }
 0x136   :  { %v343_v28 = vpop.f32.mrf.mxu0 }
 0x137   :  { %v3476_v29 = vadd.f32 %v2749_v24, %v343_v28 }
 0x138   :  { %v2878_v30 = vpop.f32.mrf.mxu0 }
 0x139   :  { %663 = vrot.lane.b32.xlu0 %v3456_v22, %s3279_s4  ;;  %351 = vrot.lane.b32.xlu1 %v3462_v23, %s3280_s19 }
 0x13d   :  { %357 = vrot.lane.b32.xlu0 %v3462_v23, %s3281_s30  ;;  %363 = vrot.lane.b32.xlu1 %v3462_v23, %s3279_s4 }
 0x141   :  { %949 = vrot.lane.b32.xlu1 %v3472_v26, %s3280_s19 }
 0x19b   :  { %v662_v38 = vpop.permute.xlu1 %661  ;;  %v650_v39 = vpop.permute.xlu0 %649 }
 0x19c   :  { %v683_v42 = vcombine.low %v650_v39, %v662_v38  ;;  %v684_v43 = vcombine.high %v650_v39, %v662_v38 }
 0x19e   :  { %v691_v49 = vrot.slane %v683_v42, %v3481_v41  ;;  %v698_v50 = vrot.slane %v684_v43, %v3481_v41 }
 0x19f   :  { %v656_v44 = vpop.permute.xlu0 %655  ;;  %v350_v45 = vpop.permute.xlu1 %349 }
 0x1a0   :  { %v667_v46 = vcombine.low %v277_v13, %v656_v44  ;;  %v668_v47 = vcombine.high %v277_v13, %v656_v44 }
 0x1a2   :  { %v675_v51 = vrot.slane %v667_v46, %v3481_v41  ;;  %v682_v52 = vrot.slane %v668_v47, %v3481_v41 }
 0x1a3   :  { %v356_v53 = vpop.permute.xlu0 %355  ;;  %v362_v54 = vpop.permute.xlu1 %361 }
 0x1a4   :  { %v699_v55 = vcombine.low %v675_v51, %v691_v49  ;;  %v700_v56 = vcombine.high %v675_v51, %v691_v49  ;;  %v715_v57 = vcombine.low %v682_v52, %v698_v50  ;;  %v716_v58 = vcombine.high %v682_v52, %v698_v50 }
 0x1a5   :  { %v367_v59 = vcombine.low %v3447_v16, %v356_v53  ;;  %v368_v60 = vcombine.high %v3447_v16, %v356_v53  ;;  %v383_v61 = vcombine.low %v350_v45, %v362_v54  ;;  %v384_v62 = vcombine.high %v350_v45, %v362_v54 }
 0x1a6   :  { %v707_v63 = vrot.slane %v699_v55, %v3484_v48  ;;  %v714_v1 = vrot.slane %v700_v56, %v3484_v48  ;;  %v723_v2 = vrot.slane %v715_v57, %v3484_v48  ;;  %v730_v3 = vrot.slane %v716_v58, %v3484_v48 }
 0x1a7   :  { %v375_v4 = vrot.slane %v367_v59, %v3481_v41  ;;  %v382_v5 = vrot.slane %v368_v60, %v3481_v41  ;;  %v391_v6 = vrot.slane %v383_v61, %v3481_v41  ;;  %v398_v7 = vrot.slane %v384_v62, %v3481_v41  ;;  %v652_v8 = vpop.permute.xlu0 %651  ;;  %v658_v9 = vpop.permute.xlu1 %657 }
 0x1a8   :  { %v803_v14 = vcombine.low %v707_v63, %v714_v1  ;;  %v2757_v15 = vcombine.high %v707_v63, %v714_v1  ;;  %v819_v16 = vcombine.low %v723_v2, %v730_v3  ;;  %v2758_v17 = vcombine.high %v723_v2, %v730_v3 }
 0x1a9   :  { %v399_v10 = vcombine.low %v375_v4, %v391_v6  ;;  %v400_v11 = vcombine.high %v375_v4, %v391_v6  ;;  %v415_v12 = vcombine.low %v382_v5, %v398_v7  ;;  %v416_v13 = vcombine.high %v382_v5, %v398_v7 }
 0x1aa   :  { %v735_v27 = vcombine.low %v3456_v22, %v658_v9  ;;  %v736_v28 = vcombine.high %v3456_v22, %v658_v9  ;;  %v810_v47 = vrot.slane %v803_v14, %v3481_v41  ;;  %v818_v49 = vrot.slane %v2757_v15, %v3481_v41 }
 0x1ab   :  { %v407_v18 = vrot.slane %v399_v10, %v3484_v48  ;;  %v414_v19 = vrot.slane %v400_v11, %v3484_v48  ;;  %v423_v20 = vrot.slane %v415_v12, %v3484_v48  ;;  %v430_v21 = vrot.slane %v416_v13, %v3484_v48  ;;  %v664_v24 = vpop.permute.xlu0 %663  ;;  %v352_v25 = vpop.permute.xlu1 %351 }
 0x1ac   :  { %v751_v30 = vcombine.low %v652_v8, %v664_v24  ;;  %v752_v31 = vcombine.high %v652_v8, %v664_v24  ;;  %v743_v36 = vrot.slane %v735_v27, %v3481_v41  ;;  %v750_v38 = vrot.slane %v736_v28, %v3481_v41 }
 0x1ad   :  { %v503_v32 = vcombine.low %v407_v18, %v414_v19  ;;  %v2753_v33 = vcombine.high %v407_v18, %v414_v19  ;;  %v519_v34 = vcombine.low %v423_v20, %v430_v21  ;;  %v2754_v35 = vcombine.high %v423_v20, %v430_v21 }
 0x1ae   :  { %v759_v39 = vrot.slane %v751_v30, %v3481_v41  ;;  %v766_v40 = vrot.slane %v752_v31, %v3481_v41  ;;  %v826_v50 = vrot.slane %v819_v16, %v3481_v41  ;;  %v834_v51 = vrot.slane %v2758_v17, %v3481_v41 }
 0x1af   :  { %v358_v46 = vpop.permute.xlu0 %357  ;;  %v364_v22 = vpop.permute.xlu1 %363  ;;  %v3515_v52 = vrot.slane %v503_v32, %v3481_v41  ;;  %v3518_v53 = vrot.slane %v2753_v33, %v3481_v41  ;;  %v3521_v54 = vrot.slane %v519_v34, %v3481_v41  ;;  %v3524_v55 = vrot.slane %v2754_v35, %v3481_v41 }
 0x1b0   :  { %v767_v42 = vcombine.low %v743_v36, %v759_v39  ;;  %v768_v43 = vcombine.high %v743_v36, %v759_v39  ;;  %v783_v44 = vcombine.low %v750_v38, %v766_v40  ;;  %v784_v45 = vcombine.high %v750_v38, %v766_v40 }
 0x1b1   :  { %v435_v56 = vcombine.low %v3462_v23, %v358_v46  ;;  %v436_v57 = vcombine.high %v3462_v23, %v358_v46  ;;  %v451_v58 = vcombine.low %v352_v25, %v364_v22  ;;  %v452_v59 = vcombine.high %v352_v25, %v364_v22 }
 0x1b2   :  { %v775_v60 = vrot.slane %v767_v42, %v3484_v48  ;;  %v782_v61 = vrot.slane %v768_v43, %v3484_v48  ;;  %v791_v62 = vrot.slane %v783_v44, %v3484_v48  ;;  %v798_v63 = vrot.slane %v784_v45, %v3484_v48 }
 0x1b3   :  { %v443_v1 = vrot.slane %v435_v56, %v3481_v41  ;;  %v450_v2 = vrot.slane %v436_v57, %v3481_v41  ;;  %v459_v3 = vrot.slane %v451_v58, %v3481_v41  ;;  %v466_v4 = vrot.slane %v452_v59, %v3481_v41 }
 0x1b4   :  { %v535_v23 = vcombine.low %v3515_v52, %v3518_v53  ;;  %v551_v5 = vcombine.low %v3521_v54, %v3524_v55  ;;  %v871_v8 = vcombine.low %v775_v60, %v782_v61  ;;  %v2759_v9 = vcombine.high %v775_v60, %v782_v61 }
 0x1b5   :  { %v467_v6 = vcombine.low %v443_v1, %v459_v3  ;;  %v468_v7 = vcombine.high %v443_v1, %v459_v3  ;;  %v835_v10 = vcombine.low %v810_v47, %v818_v49  ;;  %v851_v11 = vcombine.low %v826_v50, %v834_v51 }
 0x1b6   :  { %v887_v12 = vcombine.low %v791_v62, %v798_v63  ;;  %v2760_v13 = vcombine.high %v791_v62, %v798_v63  ;;  %v483_v14 = vcombine.low %v450_v2, %v466_v4  ;;  %v484_v15 = vcombine.high %v450_v2, %v466_v4 }
 0x1b7   :  { %v536_v16 = vcombine.high %v3515_v52, %v3518_v53  ;;  %v552_v17 = vcombine.high %v3521_v54, %v3524_v55  ;;  %v843_v18 = vrot.slane %v835_v10, %v3484_v48  ;;  %v859_v19 = vrot.slane %v851_v11, %v3484_v48 }
 0x1b8   :  { %v475_v20 = vrot.slane %v467_v6, %v3484_v48  ;;  %v482_v21 = vrot.slane %v468_v7, %v3484_v48  ;;  %v543_v24 = vrot.slane %v535_v23, %v3484_v48  ;;  %v559_v25 = vrot.slane %v551_v5, %v3484_v48 }
 0x1b9   :  { %v3551_v27 = vrot.slane %v871_v8, %v3481_v41  ;;  %v886_v28 = vrot.slane %v2759_v9, %v3481_v41  ;;  %v867_v30 = vcombine.low %v843_v18, %v859_v19  ;;  %v868_v31 = vcombine.high %v843_v18, %v859_v19 }
 0x1ba   :  { %v894_v32 = vrot.slane %v887_v12, %v3481_v41  ;;  %v902_v33 = vrot.slane %v2760_v13, %v3481_v41  ;;  %v491_v34 = vrot.slane %v483_v14, %v3484_v48  ;;  %v498_v35 = vrot.slane %v484_v15, %v3484_v48 }
 0x1bb   :  { %v939_v36 = vpack.c.bf16 %v867_v30, %v867_v30  ;;  %v940_v38 = vpack.c.bf16 %v868_v31, %v868_v31  ;;  %v836_v39 = vcombine.high %v810_v47, %v818_v49  ;;  %v852_v40 = vcombine.high %v826_v50, %v834_v51 }
 0x1bc   :  { %v571_v42 = vcombine.low %v475_v20, %v482_v21  ;;  %v2755_v43 = vcombine.high %v475_v20, %v482_v21  ;;  %v567_v44 = vcombine.low %v543_v24, %v559_v25  ;;  %v568_v45 = vcombine.high %v543_v24, %v559_v25 }
 0x1bd   :  { %v1270_v46 = vsel %vm1265_vm2, %v939_v36, 0  ;;  %v1316_v22 = vsel %vm1265_vm2, %v940_v38, 0  ;;  %v850_v52 = vrot.slane %v836_v39, %v3484_v48  ;;  %v866_v53 = vrot.slane %v852_v40, %v3484_v48 }
 0x1be   :  { %v587_v54 = vcombine.low %v491_v34, %v498_v35  ;;  %v2756_v55 = vcombine.high %v491_v34, %v498_v35  ;;  %2880 = vmatpush3.bf16.xpose.msra.mxu1 %v1270_v46  ;;  %2886 = vmatpush3.bf16.xpose.msra.mxu0 %v1316_v22  ;;  %v903_v56 = vcombine.low %v3551_v27, %v886_v28 }
 0x1bf   :  { %2891 = vmatprep.subr.bf16.mxu1 %v3277_v0  ;;  %2897 = vmatprep.subr.bf16.mxu0 %v3277_v0  ;;  %v869_v47 = vcombine.low %v850_v52, %v866_v53  ;;  %v870_v49 = vcombine.high %v850_v52, %v866_v53  ;;  %v919_v50 = vcombine.low %v894_v32, %v902_v33  ;;  %v1247_v52 = vld [vmem:[#allocation2] sm:$0x1]  ;;  %v1257_v53 = vsub.s32 0, %v3478_v37 }
 0x1c0   :  { %v911_v58 = vrot.slane %v903_v56, %v3484_v48  ;;  %v578_v60 = vrot.slane %v571_v42, %v3481_v41  ;;  %v586_v61 = vrot.slane %v2755_v43, %v3481_v41  ;;  %v639_v62 = vpack.c.bf16 %v567_v44, %v567_v44 }
 0x1c1   :  { %v941_v51 = vpack.c.bf16 %v869_v47, %v869_v47  ;;  %v942_v57 = vpack.c.bf16 %v870_v49, %v870_v49  ;;  %v927_v59 = vrot.slane %v919_v50, %v3484_v48  ;;  %v640_v63 = vpack.c.bf16 %v568_v45, %v568_v45 }
 0x1c2   :  { %v594_v1 = vrot.slane %v587_v54, %v3481_v41  ;;  %v602_v2 = vrot.slane %v2756_v55, %v3481_v41  ;;  %v550_v3 = vrot.slane %v536_v16, %v3484_v48  ;;  %v566_v4 = vrot.slane %v552_v17, %v3484_v48 }
 0x1c3   :  { %v904_v23 = vcombine.high %v3551_v27, %v886_v28  ;;  %v920_v5 = vcombine.high %v894_v32, %v902_v33  ;;  %v1362_v6 = vsel %vm1265_vm2, %v941_v51, 0  ;;  %v1408_v7 = vsel %vm1265_vm2, %v942_v57, 0 }
 0x1c4   :  { %v935_v8 = vcombine.low %v911_v58, %v927_v59  ;;  %v936_v9 = vcombine.high %v911_v58, %v927_v59  ;;  %v603_v10 = vcombine.low %v578_v60, %v586_v61  ;;  %v619_v11 = vcombine.low %v594_v1, %v602_v2 }
 0x1c5   :  { %2882 = vmatmul.mubr.msk.bf16.vlgmr.msra.gmra.mxu1 %vm1265_vm2, %v639_v62  ;;  %2888 = vmatmul.mubr.msk.bf16.vlgmr.msra.gmra.mxu0 %vm1265_vm2, %v640_v63  ;;  %v569_v12 = vcombine.low %v550_v3, %v566_v4  ;;  %v570_v13 = vcombine.high %v550_v3, %v566_v4  ;;  %v918_v16 = vrot.slane %v904_v23, %v3484_v48  ;;  %vm1249_vm3 = vcmp.eq.f32.partialorder %v1247_v52, 0.0 }
 0x1c6   :  { %2892 = vmatpush3.bf16.xpose.msra.mxu1 %v1362_v6  ;;  %2898 = vmatpush3.bf16.xpose.msra.mxu0 %v1408_v7  ;;  %v943_v14 = vpack.c.bf16 %v935_v8, %v935_v8  ;;  %v944_v15 = vpack.c.bf16 %v936_v9, %v936_v9  ;;  %v934_v17 = vrot.slane %v920_v5, %v3484_v48  ;;  %v1251_v54 = vsel %vm1249_vm3, -1e+10, %v3277_v0 }
 0x1c7   :  { %2893 = vmatprep.mubr.msk.bf16.mxu1 %vm3278_vm0, %v3277_v0  ;;  %2899 = vmatprep.mubr.msk.bf16.mxu0 %vm3278_vm0, %v3277_v0  ;;  %v641_v18 = vpack.c.bf16 %v569_v12, %v569_v12  ;;  %v642_v19 = vpack.c.bf16 %v570_v13, %v570_v13  ;;  %v611_v20 = vrot.slane %v603_v10, %v3484_v48 }
 0x1c8   :  { %2903 = vmatprep.subr.bf16.mxu1 %v3277_v0  ;;  %2909 = vmatprep.subr.bf16.mxu0 %v3277_v0  ;;  %v627_v21 = vrot.slane %v619_v11, %v3484_v48  ;;  %v1454_v24 = vsel %vm1265_vm2, %v943_v14, 0  ;;  %v1500_v25 = vsel %vm1265_vm2, %v944_v15, 0  ;;  %v937_v27 = vcombine.low %v918_v16, %v934_v17 }
 0x1c9   :  { %v938_v28 = vcombine.high %v918_v16, %v934_v17  ;;  %v604_v30 = vcombine.high %v578_v60, %v586_v61  ;;  %v620_v31 = vcombine.high %v594_v1, %v602_v2  ;;  %v1258_v55 = vrot.slane %v1251_v54, %v1257_v53  ;;  %v1248_v61 = vld [vmem:[#allocation2 + $0x1] sm:$0x1] }
 0x1ca   :  { %v635_v32 = vcombine.low %v611_v20, %v627_v21  ;;  %v636_v33 = vcombine.high %v611_v20, %v627_v21  ;;  %v945_v34 = vpack.c.bf16 %v937_v27, %v937_v27  ;;  %vm1250_vm4 = vcmp.eq.f32.partialorder %v1248_v61, 0.0 }
 0x1cb   :  { %v946_v35 = vpack.c.bf16 %v938_v28, %v938_v28  ;;  %v618_v39 = vrot.slane %v604_v30, %v3484_v48  ;;  %v634_v40 = vrot.slane %v620_v31, %v3484_v48  ;;  %v1252_v5 = vsel %vm1250_vm4, -1e+10, %v3277_v0 }
 0x1cc   :  { %v643_v36 = vpack.c.bf16 %v635_v32, %v635_v32  ;;  %v644_v38 = vpack.c.bf16 %v636_v33, %v636_v33  ;;  %v1546_v42 = vsel %vm1265_vm2, %v945_v34, 0  ;;  %v1262_v10 = vrot.slane %v1252_v5, %v1257_v53 }
 0x1cd   :  { %2894 = vmatmul.mubr.msk.bf16.vlgmr.msra.gmra.mxu1 %vm1265_vm2, %v641_v18  ;;  %2900 = vmatmul.mubr.msk.bf16.vlgmr.msra.gmra.mxu0 %vm1265_vm2, %v642_v19  ;;  %v1592_v43 = vsel %vm1265_vm2, %v946_v35, 0  ;;  %v637_v44 = vcombine.low %v618_v39, %v634_v40  ;;  %v638_v45 = vcombine.high %v618_v39, %v634_v40 }
 0x1ce   :  { %2904 = vmatpush3.bf16.xpose.msra.mxu1 %v1454_v24  ;;  %2910 = vmatpush3.bf16.xpose.msra.mxu0 %v1500_v25 }
 0x1cf   :  { %2905 = vmatprep.mubr.msk.bf16.mxu1 %vm3278_vm0, %v3277_v0  ;;  %2911 = vmatprep.mubr.msk.bf16.mxu0 %vm3278_vm0, %v3277_v0  ;;  %v645_v46 = vpack.c.bf16 %v637_v44, %v637_v44  ;;  %v646_v22 = vpack.c.bf16 %v638_v45, %v638_v45  ;;  %v950_v44 = vpop.permute.xlu1 %949 }
 0x1d0   :  { %2915 = vmatprep.subr.bf16.mxu1 %v3277_v0  ;;  %2921 = vmatprep.subr.bf16.mxu0 %v3277_v0 }
 0x1d5   :  { %2906 = vmatmul.mubr.msk.bf16.vlgmr.msra.gmra.mxu1 %vm1265_vm2, %v643_v36  ;;  %2912 = vmatmul.mubr.msk.bf16.vlgmr.msra.gmra.mxu0 %vm1265_vm2, %v644_v38 }
 0x1d6   :  { %2916 = vmatpush3.bf16.xpose.msra.mxu1 %v1546_v42  ;;  %2922 = vmatpush3.bf16.xpose.msra.mxu0 %v1592_v43 }
 0x1d7   :  { %2917 = vmatprep.mubr.msk.bf16.mxu1 %vm3278_vm0, %v3277_v0  ;;  %2923 = vmatprep.mubr.msk.bf16.mxu0 %vm3278_vm0, %v3277_v0 }
 0x1d8   :  { %2927 = vmatprep.subr.bf16.mxu1 %v3277_v0  ;;  %2933 = vmatprep.subr.bf16.mxu0 %v3277_v0 }
 0x1dd   :  { %2918 = vmatmul.mubr.msk.bf16.vlgmr.msra.gmra.mxu1 %vm1265_vm2, %v645_v46  ;;  %2924 = vmatmul.mubr.msk.bf16.vlgmr.msra.gmra.mxu0 %vm1265_vm2, %v646_v22 }
 0x1de   :  { %2929 = vmatprep.mubr.msk.bf16.mxu1 %vm3278_vm0, %v3277_v0  ;;  %2935 = vmatprep.mubr.msk.bf16.mxu0 %vm3278_vm0, %v3277_v0 }
 0x285   :  { %v1306_v56 = vpop.f32.mrf.mxu1  ;;  %v1352_v47 = vpop.f32.mrf.mxu0 }
 0x286   :  { %v3618_v49 = vadd.f32 %v1306_v56, %v1258_v55  ;;  %v3620_v50 = vadd.f32 %v1352_v47, %v1258_v55 }
 0x287   :  { %v2883_v51 = vpop.f32.mrf.mxu1  ;;  %v2889_v57 = vpop.f32.mrf.mxu0 }
 0x288   :  { %v1634_v58 = vsel %vm1265_vm2, %v3618_v49, -inf  ;;  %v1637_v59 = vsel %vm1265_vm2, %v3620_v50, -inf }
 0x289   :  { %v1309_v60 = vpop.f32.mrf.mxu1  ;;  %1635 = vmax.xlane.f32.xlu0 %v1634_v58  ;;  %1638 = vmax.xlane.f32.xlu1 %v1637_v59  ;;  %v1355_v37 = vpop.f32.mrf.mxu0 }
 0x28b   :  { %v2884_v62 = vpop.f32.mrf.mxu1  ;;  %v2890_v63 = vpop.f32.mrf.mxu0 }
 0x28d   :  { %v1398_v1 = vpop.f32.mrf.mxu1  ;;  %v1444_v2 = vpop.f32.mrf.mxu0 }
 0x28e   :  { %v1399_v3 = vadd.f32 %v1398_v1, %v1258_v55  ;;  %v1445_v6 = vadd.f32 %v1444_v2, %v1258_v55 }
 0x28f   :  { %v2895_v4 = vpop.f32.mrf.mxu1  ;;  %v2901_v23 = vpop.f32.mrf.mxu0 }
 0x290   :  { %v1640_v7 = vsel %vm1265_vm2, %v1399_v3, -inf  ;;  %v1643_v13 = vsel %vm1265_vm2, %v1445_v6, -inf }
 0x291   :  { %v1401_v8 = vpop.f32.mrf.mxu1  ;;  %1641 = vmax.xlane.f32.xlu0 %v1640_v7  ;;  %v1447_v9 = vpop.f32.mrf.mxu0 }
 0x293   :  { %v2896_v11 = vpop.f32.mrf.mxu1  ;;  %v2902_v12 = vpop.f32.mrf.mxu0 }
 0x295   :  { %v1490_v14 = vpop.f32.mrf.mxu1  ;;  %1644 = vmax.xlane.f32.xlu0 %v1643_v13  ;;  %v1536_v15 = vpop.f32.mrf.mxu0 }
 0x296   :  { %v1491_v16 = vadd.f32 %v1490_v14, %v1262_v10  ;;  %v3629_v17 = vadd.f32 %v1536_v15, %v1262_v10 }
 0x297   :  { %v2907_v18 = vpop.f32.mrf.mxu1  ;;  %v2913_v19 = vpop.f32.mrf.mxu0 }
 0x298   :  { %v1646_v20 = vsel %vm1265_vm2, %v1491_v16, -inf  ;;  %v1649_v21 = vsel %vm1265_vm2, %v3629_v17, -inf }
 0x299   :  { %v1493_v24 = vpop.f32.mrf.mxu1  ;;  %1647 = vmax.xlane.f32.xlu1 %v1646_v20  ;;  %1650 = vmax.xlane.f32.xlu0 %v1649_v21  ;;  %v1539_v25 = vpop.f32.mrf.mxu0 }
 0x29b   :  { %v2908_v27 = vpop.f32.mrf.mxu1  ;;  %v2914_v28 = vpop.f32.mrf.mxu0 }
 0x29d   :  { %v1582_v30 = vpop.f32.mrf.mxu1  ;;  %v1628_v31 = vpop.f32.mrf.mxu0 }
 0x29e   :  { %v3634_v32 = vadd.f32 %v1582_v30, %v1262_v10  ;;  %v3636_v33 = vadd.f32 %v1628_v31, %v1262_v10 }
 0x29f   :  { %v2919_v34 = vpop.f32.mrf.mxu1  ;;  %v2925_v35 = vpop.f32.mrf.mxu0 }
 0x2a0   :  { %v1652_v36 = vsel %vm1265_vm2, %v3634_v32, -inf  ;;  %v1655_v38 = vsel %vm1265_vm2, %v3636_v33, -inf }
 0x2a1   :  { %v1585_v39 = vpop.f32.mrf.mxu1  ;;  %1653 = vmax.xlane.f32.xlu1 %v1652_v36  ;;  %1656 = vmax.xlane.f32.xlu0 %v1655_v38  ;;  %v1631_v40 = vpop.f32.mrf.mxu0 }
 0x2a3   :  { %v2920_v42 = vpop.f32.mrf.mxu1  ;;  %v2926_v43 = vpop.f32.mrf.mxu0 }
 0x2b2   :  { %961 = vrot.lane.b32.xlu1 %v3472_v26, %s3279_s4 }
 0x2b7   :  { %955 = vrot.lane.b32.xlu0 %v3472_v26, %s3281_s30 }
 0x312   :  { %v1636_v45 = vpop.xlane.xlu0 %1635  ;;  %v1639_v46 = vpop.xlane.xlu1 %1638 }
 0x313   :  { %v1658_v22 = vsub.f32 %v3618_v49, %v1636_v45  ;;  %v1659_v52 = vsub.f32 %v3620_v50, %v1639_v46 }
 0x315   :  { %v1666_v53 = vmul.f32 1.442695, %v1658_v22  ;;  %v1668_v54 = vmul.f32 1.442695, %v1659_v52 }
 0x317   :  { %3054 = vpow2.f32 %v1666_v53 }
 0x318   :  { %3056 = vpow2.f32 %v1668_v54 }
 0x31a   :  { %v1642_v55 = vpop.xlane.xlu0 %1641 }
 0x31b   :  { %v1660_v56 = vsub.f32 %v1399_v3, %v1642_v55 }
 0x31d   :  { %v1670_v47 = vmul.f32 1.442695, %v1660_v56 }
 0x31e   :  { %v1645_v51 = vpop.xlane.xlu0 %1644 }
 0x31f   :  { %3058 = vpow2.f32 %v1670_v47  ;;  %v1661_v57 = vsub.f32 %v1445_v6, %v1645_v51 }
 0x321   :  { %v1672_v58 = vmul.f32 1.442695, %v1661_v57 }
 0x322   :  { %v1648_v59 = vpop.xlane.xlu1 %1647  ;;  %v3654_v62 = vpop.xlane.xlu0 %1650 }
 0x323   :  { %3060 = vpow2.f32 %v1672_v58  ;;  %v1662_v60 = vsub.f32 %v1491_v16, %v1648_v59 }
 0x324   :  { %v3648_v37 = vpop.eup %3054 }
 0x325   :  { %v3650_v61 = vpop.eup %3056  ;;  %v1674_v49 = vmul.f32 1.442695, %v1662_v60  ;;  %v1682_v50 = vsel %vm1265_vm2, %v3648_v37, 0.0  ;;  %v1663_v60 = vsub.f32 %v3629_v17, %v3654_v62 }
 0x326   :  { %1683 = vadd.xlane.f32.xlu1 %v1682_v50  ;;  %v1685_v63 = vsel %vm1265_vm2, %v3650_v61, 0.0 }
 0x327   :  { %3062 = vpow2.f32 %v1674_v49  ;;  %1686 = vadd.xlane.f32.xlu0 %v1685_v63  ;;  %v1676_v49 = vmul.f32 1.442695, %v1663_v60 }
 0x329   :  { %3064 = vpow2.f32 %v1676_v49 }
 0x32a   :  { %v3658_v1 = vpop.xlane.xlu1 %1653  ;;  %v3660_v2 = vpop.xlane.xlu0 %1656 }
 0x32b   :  { %v1664_v50 = vsub.f32 %v3634_v32, %v3658_v1  ;;  %v1665_v32 = vsub.f32 %v3636_v33, %v3660_v2 }
 0x32c   :  { %v3662_v3 = vpop.eup %3058 }
 0x32d   :  { %v1688_v4 = vsel %vm1265_vm2, %v3662_v3, 0.0  ;;  %v1678_v63 = vmul.f32 1.442695, %v1664_v50  ;;  %v1680_v62 = vmul.f32 1.442695, %v1665_v32 }
 0x32e   :  { %1689 = vadd.xlane.f32.xlu1 %v1688_v4  ;;  %v962_v23 = vpop.permute.xlu1 %961  ;;  %v956_v5 = vpop.permute.xlu0 %955 }
 0x32f   :  { %v983_v6 = vcombine.low %v950_v44, %v962_v23  ;;  %v984_v7 = vcombine.high %v950_v44, %v962_v23  ;;  %v967_v8 = vcombine.low %v3472_v26, %v956_v5  ;;  %v968_v10 = vcombine.high %v3472_v26, %v956_v5 }
 0x330   :  { %v3667_v9 = vpop.eup %3060  ;;  %3066 = vpow2.f32 %v1678_v63 }
 0x331   :  { %v991_v11 = vrot.slane %v983_v6, %v3481_v41  ;;  %v998_v12 = vrot.slane %v984_v7, %v3481_v41  ;;  %v975_v13 = vrot.slane %v967_v8, %v3481_v41  ;;  %v1691_v14 = vsel %vm1265_vm2, %v3667_v9, 0.0 }
 0x332   :  { %v982_v15 = vrot.slane %v968_v10, %v3481_v41  ;;  %1692 = vadd.xlane.f32.xlu0 %v1691_v14  ;;  %3068 = vpow2.f32 %v1680_v62 }
 0x333   :  { %v999_v16 = vcombine.low %v975_v13, %v991_v11  ;;  %v1000_v18 = vcombine.high %v975_v13, %v991_v11 }
 0x334   :  { %v3676_v19 = vpop.eup %3062  ;;  %v1015_v20 = vcombine.low %v982_v15, %v998_v12  ;;  %v1016_v21 = vcombine.high %v982_v15, %v998_v12 }
 0x335   :  { %v1007_v26 = vrot.slane %v999_v16, %v3484_v48  ;;  %v1014_v24 = vrot.slane %v1000_v18, %v3484_v48  ;;  %v1694_v25 = vsel %vm1265_vm2, %v3676_v19, 0.0 }
 0x336   :  { %v1023_v27 = vrot.slane %v1015_v20, %v3484_v48  ;;  %v1030_v28 = vrot.slane %v1016_v21, %v3484_v48  ;;  %1695 = vadd.xlane.f32.xlu0 %v1694_v25  ;;  %v3704_v4 = vpop.eup %3064 }
 0x337   :  { %v1103_v30 = vcombine.low %v1007_v26, %v1014_v24  ;;  %v2761_v31 = vcombine.high %v1007_v26, %v1014_v24  ;;  %v1697_v23 = vsel %vm1265_vm2, %v3704_v4, 0.0 }
 0x338   :  { %v1119_v34 = vcombine.low %v1023_v27, %v1030_v28  ;;  %v2762_v35 = vcombine.high %v1023_v27, %v1030_v28 }
 0x339   :  { %v1110_v36 = vrot.slane %v1103_v30, %v3481_v41  ;;  %v1118_v38 = vrot.slane %v2761_v31, %v3481_v41 }
 0x33a   :  { %v1126_v39 = vrot.slane %v1119_v34, %v3481_v41  ;;  %v1134_v40 = vrot.slane %v2762_v35, %v3481_v41 }
 0x33b   :  { %v1135_v42 = vcombine.low %v1110_v36, %v1118_v38  ;;  %v1136_v43 = vcombine.high %v1110_v36, %v1118_v38 }
 0x33c   :  { %v1151_v44 = vcombine.low %v1126_v39, %v1134_v40  ;;  %v1152_v45 = vcombine.high %v1126_v39, %v1134_v40 }
 0x33d   :  { %v1143_v46 = vrot.slane %v1135_v42, %v3484_v48  ;;  %v1150_v22 = vrot.slane %v1136_v43, %v3484_v48  ;;  %v3708_v5 = vpop.eup %3066 }
 0x33e   :  { %v1159_v52 = vrot.slane %v1151_v44, %v3484_v48  ;;  %v1166_v53 = vrot.slane %v1152_v45, %v3484_v48  ;;  %v1700_v17 = vsel %vm1265_vm2, %v3708_v5, 0.0 }
 0x33f   :  { %957 = vrot.lane.b32.xlu1 %v3476_v29, %s3281_s30  ;;  %v3716_v1 = vpop.eup %3068 }
 0x340   :  { %v1167_v54 = vcombine.low %v1143_v46, %v1159_v52  ;;  %v1168_v55 = vcombine.high %v1143_v46, %v1159_v52  ;;  %v1169_v56 = vcombine.low %v1150_v22, %v1166_v53  ;;  %v1170_v47 = vcombine.high %v1150_v22, %v1166_v53 }
 0x341   :  { %v1703_v6 = vsel %vm1265_vm2, %v3716_v1, 0.0 }
 0x342   :  { %v1239_v51 = vpack.c.bf16 %v1167_v54, %v1167_v54  ;;  %v1240_v57 = vpack.c.bf16 %v1168_v55, %v1168_v55  ;;  %v1241_v2 = vpack.c.bf16 %v1169_v56, %v1169_v56  ;;  %v1242_v15 = vpack.c.bf16 %v1170_v47, %v1170_v47 }
 0x344   :  { %v1735_v58 = vsel %vm1733_vm5, %v1239_v51, 0  ;;  %v1781_v59 = vsel %vm1733_vm5, %v1240_v57, 0  ;;  %v1827_v20 = vsel %vm1733_vm5, %v1241_v2, 0  ;;  %v1873_v21 = vsel %vm1733_vm5, %v1242_v15, 0 }
 0x345   :  { %2928 = vmatpush3.bf16.msra.mxu1 %v1735_v58  ;;  %2934 = vmatpush3.bf16.msra.mxu0 %v1781_v59 }
 0x346   :  { %2939 = vmatprep.subr.bf16.mxu1 %v3277_v0  ;;  %2945 = vmatprep.subr.bf16.mxu0 %v3277_v0 }
 0x34c   :  { %951 = vrot.lane.b32.xlu0 %v3476_v29, %s3280_s19 }
 0x363   :  { %1698 = vadd.xlane.f32.xlu1 %v1697_v23 }
 0x36b   :  { %1701 = vadd.xlane.f32.xlu0 %v1700_v17 }
 0x374   :  { %963 = vrot.lane.b32.xlu1 %v3476_v29, %s3279_s4 }
 0x398   :  { %1704 = vadd.xlane.f32.xlu1 %v1703_v6 }
 0x3af   :  { %v1684_v7 = vpop.xlane.xlu1 %1683 }
 0x3b0   :  { %3070 = vrcp.f32 %v1684_v7  ;;  %v1687_v8 = vpop.xlane.xlu0 %1686 }
 0x3b1   :  { %3072 = vrcp.f32 %v1687_v8 }
 0x3b7   :  { %v1690_v10 = vpop.xlane.xlu1 %1689 }
 0x3b8   :  { %3074 = vrcp.f32 %v1690_v10 }
 0x3bb   :  { %v1693_v11 = vpop.xlane.xlu0 %1692  ;;  %v958_v28 = vpop.permute.xlu1 %957 }
 0x3bc   :  { %3076 = vrcp.f32 %v1693_v11  ;;  %v1035_v31 = vcombine.low %v3476_v29, %v958_v28  ;;  %v1036_v34 = vcombine.high %v3476_v29, %v958_v28 }
 0x3bd   :  { %v3071_v12 = vpop.eup %3070 }
 0x3be   :  { %v3073_v13 = vpop.eup %3072  ;;  %v1714_v33 = vmul.f32 %v3071_v12, %v3648_v37  ;;  %v1043_v39 = vrot.slane %v1035_v31, %v3481_v41  ;;  %v1050_v40 = vrot.slane %v1036_v34, %v3481_v41 }
 0x3bf   :  { %v1715_v14 = vmul.f32 %v3073_v13, %v3650_v61  ;;  %v1696_v30 = vpop.xlane.xlu0 %1695 }
 0x3c0   :  { %v1722_v16 = vpack.c.bf16 %v1714_v33, %v1714_v33  ;;  %3078 = vrcp.f32 %v1696_v30 }
 0x3c1   :  { %v1723_v18 = vpack.c.bf16 %v1715_v14, %v1715_v14 }
 0x3c2   :  { %2930 = vmatmul.mubr.msk.bf16.vlgmr.msra.gmra.mxu1 %vm1265_vm2, %v1722_v16 }
 0x3c3   :  { %2936 = vmatmul.mubr.msk.bf16.vlgmr.msra.gmra.mxu0 %vm1265_vm2, %v1723_v18  ;;  %2940 = vmatpush3.bf16.msra.mxu1 %v1827_v20  ;;  %v952_v35 = vpop.permute.xlu0 %951 }
 0x3c4   :  { %2946 = vmatpush3.bf16.msra.mxu0 %v1873_v21  ;;  %2941 = vmatprep.mubr.msk.bf16.mxu1 %vm3278_vm0, %v3277_v0 }
 0x3c5   :  { %v3075_v37 = vpop.eup %3074  ;;  %2947 = vmatprep.mubr.msk.bf16.mxu0 %vm3278_vm0, %v3277_v0  ;;  %2951 = vmatprep.subr.bf16.mxu1 %v3277_v0 }
 0x3c6   :  { %v1716_v61 = vmul.f32 %v3075_v37, %v3662_v3  ;;  %2957 = vmatprep.subr.bf16.mxu0 %v3277_v0 }
 0x3c8   :  { %v1724_v26 = vpack.c.bf16 %v1716_v61, %v1716_v61 }
 0x3c9   :  { %v3077_v24 = vpop.eup %3076 }
 0x3ca   :  { %2942 = vmatmul.mubr.msk.bf16.vlgmr.msra.gmra.mxu1 %vm1265_vm2, %v1724_v26  ;;  %v1717_v25 = vmul.f32 %v3077_v24, %v3667_v9 }
 0x3cb   :  { %2953 = vmatprep.mubr.msk.bf16.mxu1 %vm3278_vm0, %v3277_v0 }
 0x3cc   :  { %v1725_v27 = vpack.c.bf16 %v1717_v25, %v1717_v25 }
 0x3cd   :  { %v3079_v32 = vpop.eup %3078 }
 0x3ce   :  { %2948 = vmatmul.mubr.msk.bf16.vlgmr.msra.gmra.mxu0 %vm1265_vm2, %v1725_v27  ;;  %v1718_v15 = vmul.f32 %v3079_v32, %v3676_v19 }
 0x3cf   :  { %2959 = vmatprep.mubr.msk.bf16.mxu0 %vm3278_vm0, %v3277_v0 }
 0x3d0   :  { %v1726_v26 = vpack.c.bf16 %v1718_v15, %v1718_v15 }
 0x3ec   :  { %v1699_v3 = vpop.xlane.xlu1 %1698 }
 0x3ed   :  { %3080 = vrcp.f32 %v1699_v3 }
 0x3f0   :  { %v964_v36 = vpop.permute.xlu1 %963 }
 0x3f1   :  { %v1051_v38 = vcombine.low %v952_v35, %v964_v36  ;;  %v1052_v9 = vcombine.high %v952_v35, %v964_v36 }
 0x3f3   :  { %v1059_v42 = vrot.slane %v1051_v38, %v3481_v41  ;;  %v1066_v43 = vrot.slane %v1052_v9, %v3481_v41 }
 0x3f4   :  { %v1702_v55 = vpop.xlane.xlu0 %1701 }
 0x3f5   :  { %v1067_v44 = vcombine.low %v1043_v39, %v1059_v42  ;;  %v1068_v45 = vcombine.high %v1043_v39, %v1059_v42  ;;  %v1083_v46 = vcombine.low %v1050_v40, %v1066_v43  ;;  %v1084_v22 = vcombine.high %v1050_v40, %v1066_v43 }
 0x3f6   :  { %3082 = vrcp.f32 %v1702_v55 }
 0x3f7   :  { %v1075_v29 = vrot.slane %v1067_v44, %v3484_v48  ;;  %v1082_v52 = vrot.slane %v1068_v45, %v3484_v48  ;;  %v1091_v53 = vrot.slane %v1083_v46, %v3484_v48  ;;  %v1098_v54 = vrot.slane %v1084_v22, %v3484_v48 }
 0x3f9   :  { %v1171_v56 = vcombine.low %v1075_v29, %v1082_v52  ;;  %v2763_v47 = vcombine.high %v1075_v29, %v1082_v52  ;;  %v1187_v51 = vcombine.low %v1091_v53, %v1098_v54  ;;  %v2764_v57 = vcombine.high %v1091_v53, %v1098_v54 }
 0x3fa   :  { %v3081_v10 = vpop.eup %3080 }
 0x3fb   :  { %v1178_v58 = vrot.slane %v1171_v56, %v3481_v41  ;;  %v1186_v59 = vrot.slane %v2763_v47, %v3481_v41  ;;  %v1194_v60 = vrot.slane %v1187_v51, %v3481_v41  ;;  %v1202_v49 = vrot.slane %v2764_v57, %v3481_v41 }
 0x3fc   :  { %v1719_v16 = vmul.f32 %v3081_v10, %v3704_v4 }
 0x3fd   :  { %v1203_v50 = vcombine.low %v1178_v58, %v1186_v59  ;;  %v1219_v63 = vcombine.low %v1194_v60, %v1202_v49  ;;  %v1204_v23 = vcombine.high %v1178_v58, %v1186_v59  ;;  %v1220_v17 = vcombine.high %v1194_v60, %v1202_v49 }
 0x3fe   :  { %v1727_v24 = vpack.c.bf16 %v1719_v16, %v1719_v16 }
 0x3ff   :  { %v1211_v62 = vrot.slane %v1203_v50, %v3484_v48  ;;  %v1227_v6 = vrot.slane %v1219_v63, %v3484_v48  ;;  %v1218_v7 = vrot.slane %v1204_v23, %v3484_v48  ;;  %v1234_v8 = vrot.slane %v1220_v17, %v3484_v48 }
 0x401   :  { %v1235_v11 = vcombine.low %v1211_v62, %v1227_v6  ;;  %v1236_v12 = vcombine.high %v1211_v62, %v1227_v6  ;;  %v1237_v13 = vcombine.low %v1218_v7, %v1234_v8  ;;  %v1238_v33 = vcombine.high %v1218_v7, %v1234_v8 }
 0x403   :  { %v1243_v2 = vpack.c.bf16 %v1235_v11, %v1235_v11  ;;  %v1244_v14 = vpack.c.bf16 %v1236_v12, %v1236_v12  ;;  %v1245_v21 = vpack.c.bf16 %v1237_v13, %v1237_v13  ;;  %v1246_v37 = vpack.c.bf16 %v1238_v33, %v1238_v33  ;;  %v3083_v61 = vpop.eup %3082 }
 0x404   :  { %v1720_v25 = vmul.f32 %v3083_v61, %v3708_v5 }
 0x405   :  { %v1919_v18 = vsel %vm1733_vm5, %v1243_v2, 0  ;;  %v1965_v20 = vsel %vm1733_vm5, %v1244_v14, 0  ;;  %v2011_v19 = vsel %vm1733_vm5, %v1245_v21, 0  ;;  %v2057_v4 = vsel %vm1733_vm5, %v1246_v37, 0 }
 0x406   :  { %2952 = vmatpush3.bf16.msra.mxu1 %v1919_v18  ;;  %2958 = vmatpush3.bf16.msra.mxu0 %v1965_v20  ;;  %v1728_v27 = vpack.c.bf16 %v1720_v25, %v1720_v25 }
 0x407   :  { %2963 = vmatprep.subr.bf16.mxu1 %v3277_v0  ;;  %2969 = vmatprep.subr.bf16.mxu0 %v3277_v0 }
 0x409   :  { %2954 = vmatmul.mubr.msk.bf16.vlgmr.msra.gmra.mxu1 %vm1265_vm2, %v1726_v26  ;;  %2960 = vmatmul.mubr.msk.bf16.vlgmr.msra.gmra.mxu0 %vm1265_vm2, %v1727_v24 }
 0x40a   :  { %2964 = vmatpush3.bf16.msra.mxu1 %v2011_v19  ;;  %2970 = vmatpush3.bf16.msra.mxu0 %v2057_v4 }
 0x40b   :  { %2965 = vmatprep.mubr.msk.bf16.mxu1 %vm3278_vm0, %v3277_v0  ;;  %2971 = vmatprep.mubr.msk.bf16.mxu0 %vm3278_vm0, %v3277_v0 }
 0x40c   :  { %2975 = vmatprep.subr.bf16.mxu1 %v3277_v0  ;;  %2983 = vmatprep.subr.bf16.mxu0 %v3277_v0 }
 0x411   :  { %2966 = vmatmul.mubr.msk.bf16.vlgmr.msra.gmra.mxu1 %vm1265_vm2, %v1728_v27 }
 0x412   :  { %2979 = vmatprep.mubr.msk.bf16.mxu1 %vm3278_vm0, %v3277_v0 }
 0x421   :  { %v1705_v28 = vpop.xlane.xlu1 %1704 }
 0x422   :  { %3084 = vrcp.f32 %v1705_v28 }
 0x42f   :  { %v3085_v30 = vpop.eup %3084 }
 0x430   :  { %v1721_v3 = vmul.f32 %v3085_v30, %v3716_v1 }
 0x432   :  { %v1729_v31 = vpack.c.bf16 %v1721_v3, %v1721_v3 }
 0x434   :  { %2972 = vmatmul.mubr.msk.bf16.vlgmr.msra.gmra.mxu0 %vm1265_vm2, %v1729_v31 }
 0x435   :  { %2987 = vmatprep.mubr.msk.bf16.mxu0 %vm3278_vm0, %v3277_v0 }
 0x482   :  { %v1771_v5 = vpop.f32.mrf.mxu1 }
 0x483   :  { %v1817_v34 = vpop.f32.mrf.mxu0 }
 0x484   :  { %v2931_v35 = vpop.f32.mrf.mxu1 }
 0x485   :  { %v2937_v36 = vpop.f32.mrf.mxu0 }
 0x486   :  { %v1774_v38 = vpop.f32.mrf.mxu1 }
 0x487   :  { %v1820_v9 = vpop.f32.mrf.mxu0 }
 0x488   :  { %v2932_v39 = vpop.f32.mrf.mxu1 }
 0x489   :  { %v2938_v40 = vpop.f32.mrf.mxu0 }
 0x48a   :  { %v1863_v42 = vpop.f32.mrf.mxu1 }
 0x48b   :  { %v2099_v43 = vcombine.low %v1771_v5, %v1863_v42  ;;  %v2100_v44 = vcombine.high %v1771_v5, %v1863_v42 }
 0x48c   :  { %v2943_v45 = vpop.f32.mrf.mxu1 }
 0x48d   :  { %v2107_v54 = vrot.slane %v2099_v43, %v3481_v41  ;;  %v2114_v55 = vrot.slane %v2100_v44, %v3481_v41 }
 0x48e   :  { %v1866_v46 = vpop.f32.mrf.mxu1  ;;  %v1909_v1 = vpop.f32.mrf.mxu0 }
 0x48f   :  { %v2115_v22 = vcombine.low %v1817_v34, %v1909_v1  ;;  %v2116_v29 = vcombine.high %v1817_v34, %v1909_v1 }
 0x490   :  { %v2944_v52 = vpop.f32.mrf.mxu1  ;;  %v2949_v53 = vpop.f32.mrf.mxu0 }
 0x491   :  { %v2123_v56 = vrot.slane %v2115_v22, %v3481_v41  ;;  %v2130_v47 = vrot.slane %v2116_v29, %v3481_v41 }
 0x492   :  { %v1912_v51 = vpop.f32.mrf.mxu0 }
 0x493   :  { %v2131_v57 = vcombine.low %v2107_v54, %v2123_v56  ;;  %v2132_v58 = vcombine.high %v2107_v54, %v2123_v56  ;;  %v2147_v59 = vcombine.low %v2114_v55, %v2130_v47  ;;  %v2148_v60 = vcombine.high %v2114_v55, %v2130_v47 }
 0x494   :  { %v2950_v49 = vpop.f32.mrf.mxu0 }
 0x495   :  { %v2139_v50 = vrot.slane %v2131_v57, %v3484_v48  ;;  %v2146_v63 = vrot.slane %v2132_v58, %v3484_v48  ;;  %v2155_v23 = vrot.slane %v2147_v59, %v3484_v48  ;;  %v2162_v17 = vrot.slane %v2148_v60, %v3484_v48  ;;  %v3046_v49 = vld [vmem:[#allocation11 + $0x8] sm:$0xff]  }
 0x496   :  { %2976 = vmatpush3.bf16.msra.mxu1 %v3046_v49 }
 0x497   :  { %v2235_v32 = vcombine.low %v2139_v50, %v2146_v63  ;;  %v2781_v62 = vcombine.high %v2139_v50, %v2146_v63  ;;  %v2251_v6 = vcombine.low %v2155_v23, %v2162_v17  ;;  %v2782_v7 = vcombine.high %v2155_v23, %v2162_v17  ;;  %2977 = vmatprep.subr.bf16.mxu1 %v3277_v0 }
 0x499   :  { %v2242_v8 = vrot.slane %v2235_v32, %v3481_v41  ;;  %v2250_v10 = vrot.slane %v2781_v62, %v3481_v41  ;;  %v2258_v11 = vrot.slane %v2251_v6, %v3481_v41  ;;  %v2266_v12 = vrot.slane %v2782_v7, %v3481_v41 }
 0x49b   :  { %v2268_v13 = vcombine.high %v2242_v8, %v2250_v10  ;;  %v2284_v33 = vcombine.high %v2258_v11, %v2266_v12  ;;  %v2267_v2 = vcombine.low %v2242_v8, %v2250_v10  ;;  %v2283_v14 = vcombine.low %v2258_v11, %v2266_v12 }
 0x49d   :  { %v3795_v15 = vrot.slane %v2268_v13, %v3484_v48  ;;  %v3798_v16 = vrot.slane %v2284_v33, %v3484_v48  ;;  %v3801_v18 = vrot.slane %v2267_v2, %v3484_v48  ;;  %v3804_v20 = vrot.slane %v2283_v14, %v3484_v48  ;;  %v3047_v13 = vld [vmem:[#allocation11] sm:$0xff]  }
 0x49e   :  { %2978 = vmatpush3.bf16.msra.mxu1 %v3047_v13 }
 0x49f   :  { %v2301_v21 = vcombine.low %v3795_v15, %v3798_v16  ;;  %v2299_v37 = vcombine.low %v3801_v18, %v3804_v20  ;;  %v2300_v61 = vcombine.high %v3801_v18, %v3804_v20  ;;  %v2302_v26 = vcombine.high %v3795_v15, %v3798_v16  ;;  %2991 = vmatprep.subr.bf16.mxu1 %v3277_v0  ;;  %v2785_v18 = vld [vmem:[#allocation13] ss:$0 sm:$0xff] }
 0x4c9   :  { %v1955_v24 = vpop.f32.mrf.mxu1  ;;  %v2001_v19 = vpop.f32.mrf.mxu0 }
 0x4cb   :  { %v2955_v4 = vpop.f32.mrf.mxu1  ;;  %v2961_v25 = vpop.f32.mrf.mxu0 }
 0x4cd   :  { %v1958_v27 = vpop.f32.mrf.mxu1  ;;  %v2004_v28 = vpop.f32.mrf.mxu0 }
 0x4cf   :  { %v2956_v30 = vpop.f32.mrf.mxu1  ;;  %v2962_v3 = vpop.f32.mrf.mxu0 }
 0x4d1   :  { %v2047_v31 = vpop.f32.mrf.mxu1 }
 0x4d2   :  { %v2167_v36 = vcombine.low %v1955_v24, %v2047_v31  ;;  %v2168_v38 = vcombine.high %v1955_v24, %v2047_v31 }
 0x4d3   :  { %v2967_v5 = vpop.f32.mrf.mxu1 }
 0x4d4   :  { %v2175_v43 = vrot.slane %v2167_v36, %v3481_v41  ;;  %v2182_v44 = vrot.slane %v2168_v38, %v3481_v41 }
 0x4d5   :  { %v2050_v34 = vpop.f32.mrf.mxu1 }
 0x4d7   :  { %v2968_v35 = vpop.f32.mrf.mxu1 }
 0x4f4   :  { %v2093_v9 = vpop.f32.mrf.mxu0 }
 0x4f5   :  { %v2183_v39 = vcombine.low %v2001_v19, %v2093_v9  ;;  %v2184_v40 = vcombine.high %v2001_v19, %v2093_v9  ;;  %v3094_v9 = vld [vmem:[%s3932_s29] sm:$0xff] }
 0x4f6   :  { %v2973_v42 = vpop.f32.mrf.mxu0 }
 0x4f7   :  { %v2191_v45 = vrot.slane %v2183_v39, %v3481_v41  ;;  %v2198_v46 = vrot.slane %v2184_v40, %v3481_v41 }
 0x4f8   :  { %v2096_v1 = vpop.f32.mrf.mxu0 }
 0x4f9   :  { %v2199_v22 = vcombine.low %v2175_v43, %v2191_v45  ;;  %v2200_v29 = vcombine.high %v2175_v43, %v2191_v45  ;;  %v2215_v52 = vcombine.low %v2182_v44, %v2198_v46  ;;  %v2216_v53 = vcombine.high %v2182_v44, %v2198_v46  ;;  %v3095_v45 = vld [vmem:[%s3932_s29 + $0x8] sm:$0xff] }
 0x4fa   :  { %v2974_v54 = vpop.f32.mrf.mxu0 }
 0x4fb   :  { %v2207_v55 = vrot.slane %v2199_v22, %v3484_v48  ;;  %v2214_v56 = vrot.slane %v2200_v29, %v3484_v48  ;;  %v2223_v47 = vrot.slane %v2215_v52, %v3484_v48  ;;  %v2230_v51 = vrot.slane %v2216_v53, %v3484_v48 }
 0x4fd   :  { %v2303_v57 = vcombine.low %v2207_v55, %v2214_v56  ;;  %v2783_v58 = vcombine.high %v2207_v55, %v2214_v56  ;;  %v2319_v59 = vcombine.low %v2223_v47, %v2230_v51  ;;  %v2784_v60 = vcombine.high %v2223_v47, %v2230_v51 }
 0x4ff   :  { %v2310_v50 = vrot.slane %v2303_v57, %v3481_v41  ;;  %v2318_v63 = vrot.slane %v2783_v58, %v3481_v41  ;;  %v2326_v23 = vrot.slane %v2319_v59, %v3481_v41  ;;  %v2334_v17 = vrot.slane %v2784_v60, %v3481_v41  ;;  %v3048_v58 = vld [vmem:[%s3918_s12 + $0x8] sm:$0xff]   ;;  %v3049_v59 = vld [vmem:[%s3918_s12] sm:$0xff]   ;;  %v3050_v60 = vld [vmem:[%s3920_s14 + $0x18] sm:$0xff]  }
 0x500   :  { %2984 = vmatpush3.bf16.msra.mxu0 %v3048_v58 }
 0x501   :  { %v2336_v32 = vcombine.high %v2310_v50, %v2318_v63  ;;  %v2352_v62 = vcombine.high %v2326_v23, %v2334_v17  ;;  %v2335_v6 = vcombine.low %v2310_v50, %v2318_v63  ;;  %v2351_v7 = vcombine.low %v2326_v23, %v2334_v17  ;;  %2985 = vmatprep.subr.bf16.mxu0 %v3277_v0 }
 0x503   :  { %v2350_v8 = vrot.slane %v2336_v32, %v3484_v48  ;;  %v2366_v10 = vrot.slane %v2352_v62, %v3484_v48  ;;  %v2343_v11 = vrot.slane %v2335_v6, %v3484_v48  ;;  %v2359_v12 = vrot.slane %v2351_v7, %v3484_v48  ;;  %v2789_v7 = vld [vmem:[%s3916_s10] ss:$0 sm:$0xff] }
 0x504   :  { %2986 = vmatpush3.bf16.msra.mxu0 %v3049_v59 }
 0x505   :  { %v2369_v33 = vcombine.low %v2350_v8, %v2366_v10  ;;  %v2368_v2 = vcombine.high %v2343_v11, %v2359_v12  ;;  %v2367_v14 = vcombine.low %v2343_v11, %v2359_v12  ;;  %v2370_v19 = vcombine.high %v2350_v8, %v2366_v10  ;;  %v2790_v12 = vld [vmem:[%s3917_s11] ss:$0 sm:$0xff] }
 0x507   :  { %v3030_v41 = vpack.i.bf16 %v2369_v33, %v2301_v21  ;;  %v3025_v24 = vpack.i.bf16 %v2368_v2, %v2300_v61  ;;  %v3035_v4 = vpack.i.bf16 %v2370_v19, %v2302_v26  ;;  %v3053_v19 = vld [vmem:[%s3920_s14] sm:$0xff]  }
 0x509   :  { %3031 = vrot.lane.b32.xlu1 %v3030_v41, %s3272_s6  ;;  %3026 = vrot.lane.b32.xlu0 %v3025_v24, %s3284_s1  ;;  %v3051_v41 = vld [vmem:[%s3920_s14 + $0x10] sm:$0xff]   ;;  %v3052_v24 = vld [vmem:[%s3920_s14 + $0x8] sm:$0xff]  }
 0x50d   :  { %3036 = vrot.lane.b32.xlu0 %v3035_v4, %s3285_s20  ;;  %v2791_v4 = vld [vmem:[%s3919_s13] ss:$0 sm:$0xff] }
 0x57b   :  { %v3032_v48 = vpop.permute.xlu1 %3031  ;;  %v3027_v25 = vpop.permute.xlu0 %3026 }
 0x57c   :  { %v3029_v27 = vunpack.i.h.bf16 %v3027_v25  ;;  %v3028_v28 = vunpack.i.l.bf16 %v3027_v25  ;;  %v3034_v30 = vunpack.i.h.bf16 %v3032_v48  ;;  %v3033_v3 = vunpack.i.l.bf16 %v3032_v48 }
 0x57e   :  { %v2395_v21 = vsel %vm1265_vm2, %v2299_v37, %v3028_v28  ;;  %v2396_v61 = vsel %vm1265_vm2, %v2367_v14, %v3029_v27 }
 0x57f   :  { %v3037_v31 = vpop.permute.xlu0 %3036  ;;  %v2398_v26 = vsel %vm2397_vm6, %v2395_v21, %v3033_v3  ;;  %v2399_v5 = vsel %vm2397_vm6, %v2396_v61, %v3034_v30 }
 0x580   :  { %v3039_v15 = vunpack.i.h.bf16 %v3037_v31  ;;  %v3038_v16 = vunpack.i.l.bf16 %v3037_v31 }
 0x582   :  { %v2401_v34 = vsel %vm2400_vm7, %v2398_v26, %v3038_v16  ;;  %v2402_v35 = vsel %vm2400_vm7, %v2399_v5, %v3039_v15 }
 0x583   :  { %v2403_v36 = vpack.c.bf16 %v2402_v35, %v2401_v34 }
 0x585   :  { %2980 = vmatmul.mubr.msk.bf16.vlgmr.msra.gmra.mxu1 %vm174_vm1, %v2403_v36 }
 0x586   :  { %2999 = vmatprep.mubr.msk.bf16.mxu1 %vm3278_vm0, %v3277_v0  ;;  %2992 = vmatpush3.bf16.msra.mxu1 %v3050_v60 }
 0x587   :  { %2993 = vmatprep.subr.bf16.mxu1 %v3277_v0 }
 0x58a   :  { %2994 = vmatpush3.bf16.msra.mxu1 %v3051_v41 }
 0x58b   :  { %2995 = vmatprep.subr.bf16.mxu1 %v3277_v0 }
 0x58e   :  { %2996 = vmatpush3.bf16.msra.mxu1 %v3052_v24 }
 0x58f   :  { %2997 = vmatprep.subr.bf16.mxu1 %v3277_v0  ;;  %v2795_v0 = vld [vmem:[%s3921_s15] ss:$0 sm:$0xff] }
 0x592   :  { %2998 = vmatpush3.bf16.msra.mxu1 %v3053_v19 }
 0x645   :  { %v2464_v20 = vpop.f32.mrf.mxu1 }
 0x646   :  { %v2465_v37 = vadd.f32 %v2785_v18, %v2464_v20 }
 0x647   :  { %v2981_v38 = vpop.f32.mrf.mxu1 }
 0x648   :  { %v2471_v39 = vadd.f32 %v3094_v9, %v2465_v37 }
 0x649   :  { %v2467_v40 = vpop.f32.mrf.mxu1 }
 0x64a   :  { %v2468_v42 = vadd.f32 %v2785_v18, %v2467_v40  ;;  %v2473_v43 = vsel %vm174_vm1, %v2471_v39, 0.0 }
 0x64b   :  { %2474 = vadd.xlane.f32.xlu1 %v2473_v43  ;;  %v2982_v44 = vpop.f32.mrf.mxu1 }
 0x64c   :  { %v2472_v46 = vadd.f32 %v3095_v45, %v2468_v42 }
 0x64e   :  { %v2476_v1 = vsel %vm174_vm1, %v2472_v46, 0.0 }
 0x64f   :  { %2477 = vadd.xlane.f32.xlu0 %v2476_v1 }
 0x6d4   :  { %v2475_v22 = vpop.xlane.xlu1 %2474 }
 0x6d5   :  { %v2480_v29 = vmul.f32 0.03125, %v2475_v22 }
 0x6d7   :  { %v2482_v52 = vsub.f32 %v2471_v39, %v2480_v29 }
 0x6d8   :  { %v2478_v53 = vpop.xlane.xlu0 %2477 }
 0x6d9   :  { %v2481_v54 = vmul.f32 0.03125, %v2478_v53  ;;  %v2484_v55 = vmul.f32 %v2482_v52, %v2482_v52 }
 0x6db   :  { %v2483_v56 = vsub.f32 %v2472_v46, %v2481_v54  ;;  %v2486_v47 = vsel %vm174_vm1, %v2484_v55, 0.0 }
 0x6dc   :  { %2487 = vadd.xlane.f32.xlu0 %v2486_v47  ;;  %v2801_v47 = vld [vmem:[%s3922_s16] ss:$0 sm:$0xff] }
 0x6dd   :  { %v2485_v51 = vmul.f32 %v2483_v56, %v2483_v56 }
 0x6df   :  { %v2489_v57 = vsel %vm174_vm1, %v2485_v51, 0.0 }
 0x6e0   :  { %2490 = vadd.xlane.f32.xlu1 %v2489_v57  ;;  %v2802_v57 = vld [vmem:[%s3923_s17] ss:$0 sm:$0xff] }
 0x765   :  { %v2488_v49 = vpop.xlane.xlu0 %2487 }
 0x766   :  { %v2492_v50 = vmul.f32 0.03125, %v2488_v49 }
 0x768   :  { %v2494_v63 = vadd.f32 1e-05, %v2492_v50 }
 0x769   :  { %v2491_v23 = vpop.xlane.xlu1 %2490 }
 0x76a   :  { %3086 = vrsqrt.f32 %v2494_v63  ;;  %v2493_v17 = vmul.f32 0.03125, %v2491_v23 }
 0x76c   :  { %v2495_v32 = vadd.f32 1e-05, %v2493_v17 }
 0x76e   :  { %3088 = vrsqrt.f32 %v2495_v32 }
 0x777   :  { %v3087_v62 = vpop.eup %3086 }
 0x778   :  { %v2498_v6 = vmul.f32 %v3087_v62, %v2482_v52 }
 0x77a   :  { %v2507_v11 = vmul.f32 %v2789_v7, %v2498_v6 }
 0x77b   :  { %v3089_v8 = vpop.eup %3088 }
 0x77c   :  { %v2499_v10 = vmul.f32 %v3089_v8, %v2483_v56  ;;  %v2516_v33 = vadd.f32 %v2790_v12, %v2507_v11 }
 0x77e   :  { %v2508_v13 = vmul.f32 %v2789_v7, %v2499_v10 }
 0x780   :  { %v2517_v2 = vadd.f32 %v2790_v12, %v2508_v13 }
 0x782   :  { %v2518_v14 = vpack.c.bf16 %v2517_v2, %v2516_v33 }
 0x784   :  { %2988 = vmatmul.mubr.msk.bf16.vlgmr.msra.gmra.mxu0 %vm174_vm1, %v2518_v14 }
 0x844   :  { %v2579_v48 = vpop.f32.mrf.mxu0 }
 0x845   :  { %v2580_v27 = vadd.f32 %v2791_v4, %v2579_v48 }
 0x846   :  { %v2989_v25 = vpop.f32.mrf.mxu0 }
 0x847   :  { %v2586_v21 = vmax.f32 %v2580_v27, 0.0 }
 0x848   :  { %v2582_v28 = vpop.f32.mrf.mxu0 }
 0x849   :  { %v2583_v30 = vadd.f32 %v2791_v4, %v2582_v28 }
 0x84a   :  { %v2990_v3 = vpop.f32.mrf.mxu0 }
 0x84b   :  { %v2587_v61 = vmax.f32 %v2583_v30, 0.0 }
 0x84d   :  { %v2588_v31 = vpack.c.bf16 %v2587_v61, %v2586_v21 }
 0x84f   :  { %3000 = vmatmul.mubr.msk.bf16.vlgmr.msra.gmra.mxu1 %vm2628_vm8, %v2588_v31 }
 0x90f   :  { %v2666_v15 = vpop.f32.mrf.mxu1 }
 0x910   :  { %v2667_v16 = vadd.f32 %v2795_v0, %v2666_v15 }
 0x911   :  { %v3001_v26 = vpop.f32.mrf.mxu1 }
 0x912   :  { %v2673_v5 = vadd.f32 %v2667_v16, %v2516_v33 }
 0x913   :  { %v2669_v34 = vpop.f32.mrf.mxu1 }
 0x914   :  { %v2670_v35 = vadd.f32 %v2795_v0, %v2669_v34  ;;  %v2675_v36 = vsel %vm174_vm1, %v2673_v5, 0.0 }
 0x915   :  { %2676 = vadd.xlane.f32.xlu0 %v2675_v36  ;;  %v3002_v18 = vpop.f32.mrf.mxu1 }
 0x916   :  { %v2674_v20 = vadd.f32 %v2670_v35, %v2517_v2 }
 0x918   :  { %v2678_v37 = vsel %vm174_vm1, %v2674_v20, 0.0 }
 0x919   :  { %2679 = vadd.xlane.f32.xlu1 %v2678_v37 }
 0x99e   :  { %v2677_v38 = vpop.xlane.xlu0 %2676 }
 0x99f   :  { %v2681_v9 = vmul.f32 0.03125, %v2677_v38 }
 0x9a1   :  { %v2683_v39 = vsub.f32 %v2673_v5, %v2681_v9 }
 0x9a2   :  { %v2680_v40 = vpop.xlane.xlu1 %2679 }
 0x9a3   :  { %v2682_v42 = vmul.f32 0.03125, %v2680_v40  ;;  %v2685_v43 = vmul.f32 %v2683_v39, %v2683_v39 }
 0x9a5   :  { %v2684_v44 = vsub.f32 %v2674_v20, %v2682_v42  ;;  %v2687_v45 = vsel %vm174_vm1, %v2685_v43, 0.0 }
 0x9a6   :  { %2688 = vadd.xlane.f32.xlu0 %v2687_v45 }
 0x9a7   :  { %v2686_v46 = vmul.f32 %v2684_v44, %v2684_v44 }
 0x9a9   :  { %v2690_v1 = vsel %vm174_vm1, %v2686_v46, 0.0 }
 0x9aa   :  { %2691 = vadd.xlane.f32.xlu1 %v2690_v1 }
 0xa2f   :  { %v2689_v22 = vpop.xlane.xlu0 %2688 }
 0xa30   :  { %v2693_v29 = vmul.f32 0.03125, %v2689_v22 }
 0xa32   :  { %v2695_v52 = vadd.f32 1e-05, %v2693_v29 }
 0xa33   :  { %v2692_v53 = vpop.xlane.xlu1 %2691 }
 0xa34   :  { %3090 = vrsqrt.f32 %v2695_v52  ;;  %v2694_v54 = vmul.f32 0.03125, %v2692_v53 }
 0xa36   :  { %v2696_v55 = vadd.f32 1e-05, %v2694_v54 }
 0xa38   :  { %3092 = vrsqrt.f32 %v2696_v55 }
 0xa41   :  { %v3091_v56 = vpop.eup %3090 }
 0xa42   :  { %v2699_v51 = vmul.f32 %v3091_v56, %v2683_v39 }
 0xa44   :  { %v2708_v58 = vmul.f32 %v2801_v47, %v2699_v51 }
 0xa45   :  { %v3093_v59 = vpop.eup %3092 }
 0xa46   :  { %v2700_v60 = vmul.f32 %v3093_v59, %v2684_v44  ;;  %v2717_v49 = vadd.f32 %v2802_v57, %v2708_v58 }
 0xa48   :  { %v2709_v50 = vmul.f32 %v2801_v47, %v2700_v60  ;;  %2719 = vst.msk [vmem:[#allocation14] sm:$0xff] %vm174_vm1, %v2717_v49 }
 0xa4a   :  { %v2718_v63 = vadd.f32 %v2802_v57, %v2709_v50 }
 0xa4c   :  { %2720 = vst.msk [vmem:[#allocation14 + $0x8] sm:$0xff] %vm174_vm1, %v2718_v63 }
 0xa4d   :  { %3247 = shalt.err (!%p3244_p11)
}
 0xa4e   :  { %s3287_s16 = smov 128  }
 0xa4f   :  { %2732 = dma.vmem_to_hbm [thread:$0]  %s2727_s21, 256, %s3924_s18, [#allocation4], %s3287_s16, %s3287_s16, %s3284_s1  }
 0xa50   :  { %3264 = dma.done.wait [#allocation4], 256  }
 0xa51   :  { %3265 = vsyncadd [#allocation4], 4294967040 }
 0xa52   :  { %2736 = vsyncpa [#allocation3], 1 }
 0xa53   :  { %2737 = vsyncpa [#allocation6], 1 }
 0xa54   :  { %2738 = vsyncpa [#allocation9], 1 }
 0xa55   :  { %2739 = vsyncpa [#allocation12], 1 }
 0xa56   :  { %2740 = vsyncpa [#allocation4], 1 }

</bundles_post_ra>
